<compile_context>
chip_gen: v5e
topology: v5e:2x2
jax: 0.10.0
libtpu: 0.0.40
codegen_flags: <defaults>
</compile_context>

<pallas_src>
import jax
import jax.numpy as jnp
from jax import lax
from jax.experimental import pallas as pl
from jax.experimental.pallas import tpu as pltpu


# ------------------------------ fused kernel --------------------------------

def _make_fused_kernel(layer_cfgs, T, N, nclass, neg_slope):
    TN = T * N

    def kernel(*refs):
        feat_ref, mask_ref = refs[0], refs[1]
        out_ref = refs[-1]
        idx = 2

        x = feat_ref[0]                     # (T*N, F_in0), rows ordered (t, n)
        neg_mask = mask_ref[...]            # (T*N, T*N) additive 0 / -1e30 mask

        # ----------------- GAT layer stack (VMEM-resident) -----------------
        for cfg in layer_cfgs:
            H, F_out = cfg["H"], cfg["F_out"]
            HF = H * F_out
            res_mode, apply_elu = cfg["res"], cfg["elu"]
            p_ref = refs[idx]               # fused projection [W | W@al | W@ar | (Wres)]
            bias_ref = refs[idx + 1]
            idx += 2

            # ONE fused projection per layer: z, src/dst scores and (optionally)
            # the fc residual all come from a single MXU matmul.
            proj = jnp.dot(x, p_ref[...], preferred_element_type=jnp.float32)  # (TN, HF+2H[+HF])
            z = proj[:, :HF]                                                   # (TN, HF)
            elT = jnp.transpose(proj[:, HF:HF + H])                            # (H, TN) src scores
            er = proj[:, HF + H:HF + 2 * H]                                    # (TN, H) dst scores

            if res_mode == "fc":
                res = proj[:, HF + 2 * H:HF + 2 * H + HF]                      # (TN, HF)
            elif res_mode == "id":
                res = x
            else:
                res = None
            bias = bias_ref[...]                                               # (1, HF)

            head_outs = []
            for h in range(H):                                                 # H == 2, static
                sl = slice(h * F_out, (h + 1) * F_out)
                # scores for all (t, dst, src); cross-t / non-edge killed by mask
                e = er[:, h:h + 1] + elT[h:h + 1, :]                           # (TN, TN)
                e = jnp.maximum(e, neg_slope * e)                              # LeakyReLU
                e = e + neg_mask                                               # additive -1e30 mask
                m = jnp.max(e, axis=1, keepdims=True)
                p = jnp.exp(e - m)                                             # masked -> exactly 0
                a = p * pl.reciprocal(jnp.sum(p, axis=1, keepdims=True), approx=True)
                o_h = jnp.dot(a, z[:, sl], preferred_element_type=jnp.float32)  # (TN, F_out)
                if res is not None:
                    o_h = o_h + res[:, sl]
                o_h = o_h + bias[:, sl]
                if apply_elu:
                    # clamp before exp so the discarded branch never produces inf
                    o_h = jnp.where(o_h > 0, o_h, jnp.exp(jnp.minimum(o_h, 0.0)) - 1.0)
                head_outs.append(o_h)
            x = jnp.concatenate(head_outs, axis=1) if H > 1 else head_outs[0]

        # ------------------ Outputlayer (same kernel) -----------------------
        (w1t_ref, b1_ref, g1_ref, be1_ref, w2_ref, g2_ref, be2_ref,
         wfc_ref, b2_ref, bfc_ref) = refs[idx:idx + 10]

        c = x.shape[1]                       # heads[-1], since last F_out == 1

        # tconv1: Conv2d(c->c, (T,1)) accumulated over time, node-major (N, c)
        y1 = jnp.zeros((N, c), dtype=jnp.float32)
        for t in range(T):                                                     # T == 4, static
            y1 = y1 + jnp.dot(x[t * N:(t + 1) * N, :], w1t_ref[t],
                              preferred_element_type=jnp.float32)
        y1 = y1 + b1_ref[...]                                                  # (1, c) bias

        # LayerNorm([nnode, c]): normalize over all N*c elements
        mu1 = jnp.mean(y1)
        var1 = jnp.mean(jnp.square(y1 - mu1))
        y1n = (y1 - mu1) * lax.rsqrt(var1 + 1e-5) * g1_ref[...] + be1_ref[...]

        # tconv2: 1x1 conv c -> 1  (scalar bias from SMEM)
        y2 = jnp.dot(y1n, w2_ref[...], preferred_element_type=jnp.float32) + b2_ref[0, 0]  # (N, 1)

        # LayerNorm([nnode, 1])
        mu2 = jnp.mean(y2)
        var2 = jnp.mean(jnp.square(y2 - mu2))
        y2n = (y2 - mu2) * lax.rsqrt(var2 + 1e-5) * g2_ref[...] + be2_ref[...]

        # fc: Conv2d(1->1, (1, N-nclass+1)) as banded multiply + sublane reduce
        out = jnp.sum(y2n * wfc_ref[...], axis=0, keepdims=True) + bfc_ref[0, 0]  # (1, nclass)
        out_ref[0] = out

    return kernel


# ------------------------------ full forward --------------------------------

def gat_forward(inputs, adj, gat_params, out_params, *, nclass, neg_slope):
    # inputs: (B, in_dim, T, N)  (matches PyTorch `inputs` before transposes)
    B, F_in0, T, N = inputs.shape
    TN = T * N

    # torch: h = inputs.transpose(0,3).transpose(1,3) -> (N, B, T, F_in)
    # ours:  (B, T*N, F_in) with rows ordered (t, n) -- same per-(b,t) slices.
    feat = jnp.transpose(inputs.astype(jnp.float32), (0, 2, 3, 1)).reshape(B, TN, F_in0)

    # block-diagonal additive mask: 0 where (same timestep AND edge), else -1e30
    big_adj = jnp.kron(jnp.eye(T, dtype=jnp.float32), (adj > 0).astype(jnp.float32))
    neg_mask = jnp.where(big_adj > 0, 0.0, -1e30).astype(jnp.float32)

    operands = [feat, neg_mask]
    in_specs = [
        pl.BlockSpec((1, TN, F_in0), lambda b: (b, 0, 0)),
        pl.BlockSpec((TN, TN), lambda b: (0, 0)),
    ]

    def add_vmem(arr):
        operands.append(arr)
        zeros = (0,) * arr.ndim
        in_specs.append(pl.BlockSpec(arr.shape, lambda b, _z=zeros: _z))

    layer_cfgs = []
    n_layers = len(gat_params)
    for i, p in enumerate(gat_params):
        H, F_out = p["H"], p["F_out"]
        HF = H * F_out
        # per-head score projections folded through W:
        #   el = (x @ W) @ al_mat == x @ (W @ al_mat)   (same for ar)
        head_id = jnp.arange(HF) // F_out
        sel = (head_id[:, None] == jnp.arange(H)[None, :]).astype(jnp.float32)
        al_mat = jnp.transpose(p["al"]) * sel               # (HF, H)
        ar_mat = jnp.transpose(p["ar"]) * sel
        cols = [p["W"], p["W"] @ al_mat, p["W"] @ ar_mat]    # (F_in, HF+2H)
        if p["res"] == "fc":
            cols.append(p["Wres"])                           # (+HF) fc residual
        P = jnp.concatenate(cols, axis=1).astype(jnp.float32)

        add_vmem(P)
        add_vmem(p["bias"])
        layer_cfgs.append(dict(H=H, F_out=F_out, res=p["res"], elu=(i < n_layers - 1)))

    (w1t, b1, g1, be1, w2, b2, g2, be2, Wmat, bfc) = out_params
    for arr in (w1t, b1, g1, be1, w2, g2, be2, Wmat):
        add_vmem(arr)
    # scalar conv biases live in SMEM
    for arr in (b2, bfc):
        operands.append(arr)
        in_specs.append(pl.BlockSpec(memory_space=pltpu.MemorySpace.SMEM))

    kernel = _make_fused_kernel(layer_cfgs, T, N, nclass, neg_slope)
    out = pl.pallas_call(
        kernel,
        out_shape=jax.ShapeDtypeStruct((B, 1, nclass), jnp.float32),
        grid=(B,),
        in_specs=in_specs,
        out_specs=pl.BlockSpec((1, 1, nclass), lambda b: (b, 0, 0)),
        compiler_params=pltpu.CompilerParams(dimension_semantics=("parallel",)),
    )(*operands)
    return out.reshape(B, nclass)


# --------------------------------- main --------------------------------------

if __name__ == "__main__":
    # config (small, consistent with the module)
    B, in_dim, T, N = 2, 4, 4, 8          # batch, in_dim, time, num_node
    nlayers, nhidden, nclass = 2, 8, 3
    heads = [2, 2, 2]
    neg_slope = 0.2

    key = jax.random.PRNGKey(0)
    keys = iter(jax.random.split(key, 64))

    def rnd(shape, scale=0.2):
        return (scale * jax.random.normal(next(keys), shape)).astype(jnp.float32)

    # graph: ring + self-loops, dense adjacency mask adj[dst, src]
    idx = jnp.arange(N)
    adj = ((idx[:, None] == idx[None, :])
           | (idx[:, None] == (idx[None, :] + 1) % N)
           | ((idx[:, None] + 1) % N == idx[None, :])).astype(jnp.float32)

    # GAT layer parameters
    layer_shapes = [
        dict(F_in=in_dim, F_out=nhidden, H=heads[0], res="none"),              # layer 0 (no residual)
        dict(F_in=nhidden * heads[0], F_out=nhidden, H=heads[1], res="id"),    # layer 1 (identity res)
        dict(F_in=nhidden * heads[1], F_out=1, H=heads[2], res="fc"),          # output GAT (linear res)
    ]
    gat_params = []
    for cfg in layer_shapes:
        F_i, F_o, H = cfg["F_in"], cfg["F_out"], cfg["H"]
        HF = H * F_o
        p = dict(W=rnd((F_i, HF)), al=rnd((1, HF)), ar=rnd((1, HF)),
                 bias=rnd((1, HF), scale=0.05), H=H, F_out=F_o, res=cfg["res"])
        if cfg["res"] == "fc":
            p["Wres"] = rnd((F_i, HF))
        gat_params.append(p)

    # Outputlayer parameters (c = heads[-1])
    c = heads[-1]
    K = N - nclass + 1
    w1t = rnd((T, c, c))                  # Conv2d(c->c,(T,1)) weight, [t, c_in, c_out]
    b1 = rnd((1, c), scale=0.05)
    g1 = 1.0 + rnd((N, c), scale=0.05)    # LayerNorm([nnode, c]) weight
    be1 = rnd((N, c), scale=0.05)
    w2 = rnd((c, 1))                      # Conv2d(c->1, 1x1) weight, (c_in, 1)
    b2 = rnd((1, 1), scale=0.05)
    g2 = 1.0 + rnd((N, 1), scale=0.05)    # LayerNorm([nnode, 1]) weight
    be2 = rnd((N, 1), scale=0.05)
    wf = rnd((K,))                        # Conv2d(1->1, (1, K)) taps
    bfc = rnd((1, 1), scale=0.05)
    Wmat = jnp.zeros((N, nclass), jnp.float32)   # banded matrix for sliding window
    for j in range(nclass):
        Wmat = Wmat.at[j:j + K, j].set(wf)
    out_params = (w1t, b1, g1, be1, w2, b2, g2, be2, Wmat, bfc)

    # deterministic example input:  (B, in_dim, T, num_node)
    inputs = jax.random.normal(jax.random.PRNGKey(0), (B, in_dim, T, N), dtype=jnp.float32)

    out = gat_forward(inputs, adj, gat_params, out_params,
                      nclass=nclass, neg_slope=neg_slope)
    out = jax.block_until_ready(out)
    assert out.shape == (B, nclass) and out.dtype == jnp.float32
    assert bool(jnp.all(jnp.isfinite(out)))
    print("KERNEL_OK")
</pallas_src>

<mosaic_0001>
module attributes {stable_mosaic.version = 11 : i64} {
  func.func @kernel(%arg0: i32, %arg1: memref<1x32x4xf32, #tpu.memory_space<vmem>>, %arg2: memref<32x32xf32, #tpu.memory_space<vmem>>, %arg3: memref<4x20xf32, #tpu.memory_space<vmem>>, %arg4: memref<1x16xf32, #tpu.memory_space<vmem>>, %arg5: memref<16x20xf32, #tpu.memory_space<vmem>>, %arg6: memref<1x16xf32, #tpu.memory_space<vmem>>, %arg7: memref<16x8xf32, #tpu.memory_space<vmem>>, %arg8: memref<1x2xf32, #tpu.memory_space<vmem>>, %arg9: memref<4x2x2xf32, #tpu.memory_space<vmem>>, %arg10: memref<1x2xf32, #tpu.memory_space<vmem>>, %arg11: memref<8x2xf32, #tpu.memory_space<vmem>>, %arg12: memref<8x2xf32, #tpu.memory_space<vmem>>, %arg13: memref<2x1xf32, #tpu.memory_space<vmem>>, %arg14: memref<8x1xf32, #tpu.memory_space<vmem>>, %arg15: memref<8x1xf32, #tpu.memory_space<vmem>>, %arg16: memref<8x3xf32, #tpu.memory_space<vmem>>, %arg17: memref<1x1xf32, #tpu.memory_space<smem>>, %arg18: memref<1x1xf32, #tpu.memory_space<smem>>, %arg19: memref<1x1x3xf32, #tpu.memory_space<vmem>>) attributes {dimension_semantics = [#tpu.dimension_semantics<parallel>], iteration_bounds = array<i64: 2>, scalar_prefetch = 0 : i64, scratch_operands = 0 : i64, tpu.core_type = #tpu.core_type<tc>, window_params = [{transform_indices = @transform_0, window_bounds = array<i64: 1, 32, 4>}, {pipeline_mode = #tpu.pipeline_mode<synchronous>, transform_indices = @transform_1, window_bounds = array<i64: 32, 32>}, {pipeline_mode = #tpu.pipeline_mode<synchronous>, transform_indices = @transform_2, window_bounds = array<i64: 4, 20>}, {pipeline_mode = #tpu.pipeline_mode<synchronous>, transform_indices = @transform_3, window_bounds = array<i64: 1, 16>}, {pipeline_mode = #tpu.pipeline_mode<synchronous>, transform_indices = @transform_4, window_bounds = array<i64: 16, 20>}, {pipeline_mode = #tpu.pipeline_mode<synchronous>, transform_indices = @transform_5, window_bounds = array<i64: 1, 16>}, {pipeline_mode = #tpu.pipeline_mode<synchronous>, transform_indices = @transform_6, window_bounds = array<i64: 16, 8>}, {pipeline_mode = #tpu.pipeline_mode<synchronous>, transform_indices = @transform_7, window_bounds = array<i64: 1, 2>}, {pipeline_mode = #tpu.pipeline_mode<synchronous>, transform_indices = @transform_8, window_bounds = array<i64: 4, 2, 2>}, {pipeline_mode = #tpu.pipeline_mode<synchronous>, transform_indices = @transform_9, window_bounds = array<i64: 1, 2>}, {pipeline_mode = #tpu.pipeline_mode<synchronous>, transform_indices = @transform_10, window_bounds = array<i64: 8, 2>}, {pipeline_mode = #tpu.pipeline_mode<synchronous>, transform_indices = @transform_11, window_bounds = array<i64: 8, 2>}, {pipeline_mode = #tpu.pipeline_mode<synchronous>, transform_indices = @transform_12, window_bounds = array<i64: 2, 1>}, {pipeline_mode = #tpu.pipeline_mode<synchronous>, transform_indices = @transform_13, window_bounds = array<i64: 8, 1>}, {pipeline_mode = #tpu.pipeline_mode<synchronous>, transform_indices = @transform_14, window_bounds = array<i64: 8, 1>}, {pipeline_mode = #tpu.pipeline_mode<synchronous>, transform_indices = @transform_15, window_bounds = array<i64: 8, 3>}, {transform_indices = @transform_16, window_bounds = array<i64: 1, 1>}, {transform_indices = @transform_17, window_bounds = array<i64: 1, 1>}, {transform_indices = @transform_18, window_bounds = array<i64: 1, 1, 3>}]} {
    %c0 = arith.constant 0 : index
    %c0_0 = arith.constant 0 : index
    %c0_1 = arith.constant 0 : index
    %0 = vector.load %arg1[%c0, %c0_0, %c0_1] : memref<1x32x4xf32, #tpu.memory_space<vmem>>, vector<1x32x4xf32>
    %1 = vector.shape_cast %0 : vector<1x32x4xf32> to vector<32x4xf32>
    %c0_2 = arith.constant 0 : index
    %c0_3 = arith.constant 0 : index
    %2 = vector.load %arg2[%c0_2, %c0_3] : memref<32x32xf32, #tpu.memory_space<vmem>>, vector<32x32xf32>
    %c0_4 = arith.constant 0 : index
    %c0_5 = arith.constant 0 : index
    %3 = vector.load %arg3[%c0_4, %c0_5] : memref<4x20xf32, #tpu.memory_space<vmem>>, vector<4x20xf32>
    %cst = arith.constant dense<0.000000e+00> : vector<32x20xf32>
    %4 = tpu.matmul %1, %3, %cst {dimension_numbers = #tpu.dot_dimension_numbers<[1], [0], [0], [1], [0, 0, 1, 1], [], []>} : vector<32x4xf32>, vector<4x20xf32>, vector<32x20xf32> -> vector<32x20xf32>
    %5 = vector.extract_strided_slice %4 {offsets = [0, 0], sizes = [32, 16], strides = [1, 1]} : vector<32x20xf32> to vector<32x16xf32>
    %6 = vector.extract_strided_slice %4 {offsets = [0, 16], sizes = [32, 2], strides = [1, 1]} : vector<32x20xf32> to vector<32x2xf32>
    %7 = tpu.transpose %6, [1, 0] : vector<32x2xf32> -> vector<2x32xf32>
    %8 = vector.extract_strided_slice %4 {offsets = [0, 18], sizes = [32, 2], strides = [1, 1]} : vector<32x20xf32> to vector<32x2xf32>
    %c0_6 = arith.constant 0 : index
    %c0_7 = arith.constant 0 : index
    %9 = vector.load %arg4[%c0_6, %c0_7] : memref<1x16xf32, #tpu.memory_space<vmem>>, vector<1x16xf32>
    %10 = vector.extract_strided_slice %8 {offsets = [0, 0], sizes = [32, 1], strides = [1, 1]} : vector<32x2xf32> to vector<32x1xf32>
    %11 = vector.extract_strided_slice %7 {offsets = [0, 0], sizes = [1, 32], strides = [1, 1]} : vector<2x32xf32> to vector<1x32xf32>
    %12 = vector.broadcast %10 : vector<32x1xf32> to vector<32x32xf32>
    %13 = vector.broadcast %11 : vector<1x32xf32> to vector<32x32xf32>
    %14 = arith.addf %12, %13 : vector<32x32xf32>
    %cst_8 = arith.constant 2.000000e-01 : f32
    %15 = vector.broadcast %cst_8 : f32 to vector<32x32xf32>
    %16 = arith.mulf %15, %14 : vector<32x32xf32>
    %17 = arith.maximumf %14, %16 : vector<32x32xf32>
    %18 = arith.addf %17, %2 : vector<32x32xf32>
    %cst_9 = arith.constant dense<0xFF800000> : vector<32xf32>
    %19 = vector.multi_reduction <maximumf>, %18, %cst_9 [1] : vector<32x32xf32> to vector<32xf32>
    %20 = vector.shape_cast %19 : vector<32xf32> to vector<32x1xf32>
    %21 = vector.broadcast %20 : vector<32x1xf32> to vector<32x32xf32>
    %22 = arith.subf %18, %21 : vector<32x32xf32>
    %23 = math.exp %22 : vector<32x32xf32>
    %cst_10 = arith.constant dense<0.000000e+00> : vector<32xf32>
    %24 = vector.multi_reduction <add>, %23, %cst_10 [1] : vector<32x32xf32> to vector<32xf32>
    %25 = vector.shape_cast %24 : vector<32xf32> to vector<32x1xf32>
    %26 = tpu.reciprocal %25 {approx = true} : vector<32x1xf32> -> vector<32x1xf32>
    %27 = vector.broadcast %26 : vector<32x1xf32> to vector<32x32xf32>
    %28 = arith.mulf %23, %27 : vector<32x32xf32>
    %29 = vector.extract_strided_slice %5 {offsets = [0, 0], sizes = [32, 8], strides = [1, 1]} : vector<32x16xf32> to vector<32x8xf32>
    %cst_11 = arith.constant dense<0.000000e+00> : vector<32x8xf32>
    %30 = tpu.matmul %28, %29, %cst_11 {dimension_numbers = #tpu.dot_dimension_numbers<[1], [0], [0], [1], [0, 0, 1, 1], [], []>} : vector<32x32xf32>, vector<32x8xf32>, vector<32x8xf32> -> vector<32x8xf32>
    %31 = vector.extract_strided_slice %9 {offsets = [0, 0], sizes = [1, 8], strides = [1, 1]} : vector<1x16xf32> to vector<1x8xf32>
    %32 = vector.broadcast %31 : vector<1x8xf32> to vector<32x8xf32>
    %33 = arith.addf %30, %32 : vector<32x8xf32>
    %cst_12 = arith.constant 0.000000e+00 : f32
    %34 = vector.broadcast %cst_12 : f32 to vector<32x8xf32>
    %35 = arith.cmpf ogt, %33, %34 : vector<32x8xf32>
    %cst_13 = arith.constant 0.000000e+00 : f32
    %36 = vector.broadcast %cst_13 : f32 to vector<32x8xf32>
    %37 = arith.minimumf %33, %36 : vector<32x8xf32>
    %38 = math.exp %37 : vector<32x8xf32>
    %cst_14 = arith.constant 1.000000e+00 : f32
    %39 = vector.broadcast %cst_14 : f32 to vector<32x8xf32>
    %40 = arith.subf %38, %39 : vector<32x8xf32>
    %41 = arith.select %35, %33, %40 : vector<32x8xi1>, vector<32x8xf32>
    %42 = vector.extract_strided_slice %8 {offsets = [0, 1], sizes = [32, 1], strides = [1, 1]} : vector<32x2xf32> to vector<32x1xf32>
    %43 = vector.extract_strided_slice %7 {offsets = [1, 0], sizes = [1, 32], strides = [1, 1]} : vector<2x32xf32> to vector<1x32xf32>
    %44 = vector.broadcast %42 : vector<32x1xf32> to vector<32x32xf32>
    %45 = vector.broadcast %43 : vector<1x32xf32> to vector<32x32xf32>
    %46 = arith.addf %44, %45 : vector<32x32xf32>
    %cst_15 = arith.constant 2.000000e-01 : f32
    %47 = vector.broadcast %cst_15 : f32 to vector<32x32xf32>
    %48 = arith.mulf %47, %46 : vector<32x32xf32>
    %49 = arith.maximumf %46, %48 : vector<32x32xf32>
    %50 = arith.addf %49, %2 : vector<32x32xf32>
    %cst_16 = arith.constant dense<0xFF800000> : vector<32xf32>
    %51 = vector.multi_reduction <maximumf>, %50, %cst_16 [1] : vector<32x32xf32> to vector<32xf32>
    %52 = vector.shape_cast %51 : vector<32xf32> to vector<32x1xf32>
    %53 = vector.broadcast %52 : vector<32x1xf32> to vector<32x32xf32>
    %54 = arith.subf %50, %53 : vector<32x32xf32>
    %55 = math.exp %54 : vector<32x32xf32>
    %cst_17 = arith.constant dense<0.000000e+00> : vector<32xf32>
    %56 = vector.multi_reduction <add>, %55, %cst_17 [1] : vector<32x32xf32> to vector<32xf32>
    %57 = vector.shape_cast %56 : vector<32xf32> to vector<32x1xf32>
    %58 = tpu.reciprocal %57 {approx = true} : vector<32x1xf32> -> vector<32x1xf32>
    %59 = vector.broadcast %58 : vector<32x1xf32> to vector<32x32xf32>
    %60 = arith.mulf %55, %59 : vector<32x32xf32>
    %61 = vector.extract_strided_slice %5 {offsets = [0, 8], sizes = [32, 8], strides = [1, 1]} : vector<32x16xf32> to vector<32x8xf32>
    %cst_18 = arith.constant dense<0.000000e+00> : vector<32x8xf32>
    %62 = tpu.matmul %60, %61, %cst_18 {dimension_numbers = #tpu.dot_dimension_numbers<[1], [0], [0], [1], [0, 0, 1, 1], [], []>} : vector<32x32xf32>, vector<32x8xf32>, vector<32x8xf32> -> vector<32x8xf32>
    %63 = vector.extract_strided_slice %9 {offsets = [0, 8], sizes = [1, 8], strides = [1, 1]} : vector<1x16xf32> to vector<1x8xf32>
    %64 = vector.broadcast %63 : vector<1x8xf32> to vector<32x8xf32>
    %65 = arith.addf %62, %64 : vector<32x8xf32>
    %cst_19 = arith.constant 0.000000e+00 : f32
    %66 = vector.broadcast %cst_19 : f32 to vector<32x8xf32>
    %67 = arith.cmpf ogt, %65, %66 : vector<32x8xf32>
    %cst_20 = arith.constant 0.000000e+00 : f32
    %68 = vector.broadcast %cst_20 : f32 to vector<32x8xf32>
    %69 = arith.minimumf %65, %68 : vector<32x8xf32>
    %70 = math.exp %69 : vector<32x8xf32>
    %cst_21 = arith.constant 1.000000e+00 : f32
    %71 = vector.broadcast %cst_21 : f32 to vector<32x8xf32>
    %72 = arith.subf %70, %71 : vector<32x8xf32>
    %73 = arith.select %67, %65, %72 : vector<32x8xi1>, vector<32x8xf32>
    %74 = tpu.concatenate %41, %73 in 1 : vector<32x8xf32>, vector<32x8xf32> -> vector<32x16xf32>
    %c0_22 = arith.constant 0 : index
    %c0_23 = arith.constant 0 : index
    %75 = vector.load %arg5[%c0_22, %c0_23] : memref<16x20xf32, #tpu.memory_space<vmem>>, vector<16x20xf32>
    %cst_24 = arith.constant dense<0.000000e+00> : vector<32x20xf32>
    %76 = tpu.matmul %74, %75, %cst_24 {dimension_numbers = #tpu.dot_dimension_numbers<[1], [0], [0], [1], [0, 0, 1, 1], [], []>} : vector<32x16xf32>, vector<16x20xf32>, vector<32x20xf32> -> vector<32x20xf32>
    %77 = vector.extract_strided_slice %76 {offsets = [0, 0], sizes = [32, 16], strides = [1, 1]} : vector<32x20xf32> to vector<32x16xf32>
    %78 = vector.extract_strided_slice %76 {offsets = [0, 16], sizes = [32, 2], strides = [1, 1]} : vector<32x20xf32> to vector<32x2xf32>
    %79 = tpu.transpose %78, [1, 0] : vector<32x2xf32> -> vector<2x32xf32>
    %80 = vector.extract_strided_slice %76 {offsets = [0, 18], sizes = [32, 2], strides = [1, 1]} : vector<32x20xf32> to vector<32x2xf32>
    %c0_25 = arith.constant 0 : index
    %c0_26 = arith.constant 0 : index
    %81 = vector.load %arg6[%c0_25, %c0_26] : memref<1x16xf32, #tpu.memory_space<vmem>>, vector<1x16xf32>
    %82 = vector.extract_strided_slice %80 {offsets = [0, 0], sizes = [32, 1], strides = [1, 1]} : vector<32x2xf32> to vector<32x1xf32>
    %83 = vector.extract_strided_slice %79 {offsets = [0, 0], sizes = [1, 32], strides = [1, 1]} : vector<2x32xf32> to vector<1x32xf32>
    %84 = vector.broadcast %82 : vector<32x1xf32> to vector<32x32xf32>
    %85 = vector.broadcast %83 : vector<1x32xf32> to vector<32x32xf32>
    %86 = arith.addf %84, %85 : vector<32x32xf32>
    %cst_27 = arith.constant 2.000000e-01 : f32
    %87 = vector.broadcast %cst_27 : f32 to vector<32x32xf32>
    %88 = arith.mulf %87, %86 : vector<32x32xf32>
    %89 = arith.maximumf %86, %88 : vector<32x32xf32>
    %90 = arith.addf %89, %2 : vector<32x32xf32>
    %cst_28 = arith.constant dense<0xFF800000> : vector<32xf32>
    %91 = vector.multi_reduction <maximumf>, %90, %cst_28 [1] : vector<32x32xf32> to vector<32xf32>
    %92 = vector.shape_cast %91 : vector<32xf32> to vector<32x1xf32>
    %93 = vector.broadcast %92 : vector<32x1xf32> to vector<32x32xf32>
    %94 = arith.subf %90, %93 : vector<32x32xf32>
    %95 = math.exp %94 : vector<32x32xf32>
    %cst_29 = arith.constant dense<0.000000e+00> : vector<32xf32>
    %96 = vector.multi_reduction <add>, %95, %cst_29 [1] : vector<32x32xf32> to vector<32xf32>
    %97 = vector.shape_cast %96 : vector<32xf32> to vector<32x1xf32>
    %98 = tpu.reciprocal %97 {approx = true} : vector<32x1xf32> -> vector<32x1xf32>
    %99 = vector.broadcast %98 : vector<32x1xf32> to vector<32x32xf32>
    %100 = arith.mulf %95, %99 : vector<32x32xf32>
    %101 = vector.extract_strided_slice %77 {offsets = [0, 0], sizes = [32, 8], strides = [1, 1]} : vector<32x16xf32> to vector<32x8xf32>
    %cst_30 = arith.constant dense<0.000000e+00> : vector<32x8xf32>
    %102 = tpu.matmul %100, %101, %cst_30 {dimension_numbers = #tpu.dot_dimension_numbers<[1], [0], [0], [1], [0, 0, 1, 1], [], []>} : vector<32x32xf32>, vector<32x8xf32>, vector<32x8xf32> -> vector<32x8xf32>
    %103 = vector.extract_strided_slice %74 {offsets = [0, 0], sizes = [32, 8], strides = [1, 1]} : vector<32x16xf32> to vector<32x8xf32>
    %104 = arith.addf %102, %103 : vector<32x8xf32>
    %105 = vector.extract_strided_slice %81 {offsets = [0, 0], sizes = [1, 8], strides = [1, 1]} : vector<1x16xf32> to vector<1x8xf32>
    %106 = vector.broadcast %105 : vector<1x8xf32> to vector<32x8xf32>
    %107 = arith.addf %104, %106 : vector<32x8xf32>
    %cst_31 = arith.constant 0.000000e+00 : f32
    %108 = vector.broadcast %cst_31 : f32 to vector<32x8xf32>
    %109 = arith.cmpf ogt, %107, %108 : vector<32x8xf32>
    %cst_32 = arith.constant 0.000000e+00 : f32
    %110 = vector.broadcast %cst_32 : f32 to vector<32x8xf32>
    %111 = arith.minimumf %107, %110 : vector<32x8xf32>
    %112 = math.exp %111 : vector<32x8xf32>
    %cst_33 = arith.constant 1.000000e+00 : f32
    %113 = vector.broadcast %cst_33 : f32 to vector<32x8xf32>
    %114 = arith.subf %112, %113 : vector<32x8xf32>
    %115 = arith.select %109, %107, %114 : vector<32x8xi1>, vector<32x8xf32>
    %116 = vector.extract_strided_slice %80 {offsets = [0, 1], sizes = [32, 1], strides = [1, 1]} : vector<32x2xf32> to vector<32x1xf32>
    %117 = vector.extract_strided_slice %79 {offsets = [1, 0], sizes = [1, 32], strides = [1, 1]} : vector<2x32xf32> to vector<1x32xf32>
    %118 = vector.broadcast %116 : vector<32x1xf32> to vector<32x32xf32>
    %119 = vector.broadcast %117 : vector<1x32xf32> to vector<32x32xf32>
    %120 = arith.addf %118, %119 : vector<32x32xf32>
    %cst_34 = arith.constant 2.000000e-01 : f32
    %121 = vector.broadcast %cst_34 : f32 to vector<32x32xf32>
    %122 = arith.mulf %121, %120 : vector<32x32xf32>
    %123 = arith.maximumf %120, %122 : vector<32x32xf32>
    %124 = arith.addf %123, %2 : vector<32x32xf32>
    %cst_35 = arith.constant dense<0xFF800000> : vector<32xf32>
    %125 = vector.multi_reduction <maximumf>, %124, %cst_35 [1] : vector<32x32xf32> to vector<32xf32>
    %126 = vector.shape_cast %125 : vector<32xf32> to vector<32x1xf32>
    %127 = vector.broadcast %126 : vector<32x1xf32> to vector<32x32xf32>
    %128 = arith.subf %124, %127 : vector<32x32xf32>
    %129 = math.exp %128 : vector<32x32xf32>
    %cst_36 = arith.constant dense<0.000000e+00> : vector<32xf32>
    %130 = vector.multi_reduction <add>, %129, %cst_36 [1] : vector<32x32xf32> to vector<32xf32>
    %131 = vector.shape_cast %130 : vector<32xf32> to vector<32x1xf32>
    %132 = tpu.reciprocal %131 {approx = true} : vector<32x1xf32> -> vector<32x1xf32>
    %133 = vector.broadcast %132 : vector<32x1xf32> to vector<32x32xf32>
    %134 = arith.mulf %129, %133 : vector<32x32xf32>
    %135 = vector.extract_strided_slice %77 {offsets = [0, 8], sizes = [32, 8], strides = [1, 1]} : vector<32x16xf32> to vector<32x8xf32>
    %cst_37 = arith.constant dense<0.000000e+00> : vector<32x8xf32>
    %136 = tpu.matmul %134, %135, %cst_37 {dimension_numbers = #tpu.dot_dimension_numbers<[1], [0], [0], [1], [0, 0, 1, 1], [], []>} : vector<32x32xf32>, vector<32x8xf32>, vector<32x8xf32> -> vector<32x8xf32>
    %137 = vector.extract_strided_slice %74 {offsets = [0, 8], sizes = [32, 8], strides = [1, 1]} : vector<32x16xf32> to vector<32x8xf32>
    %138 = arith.addf %136, %137 : vector<32x8xf32>
    %139 = vector.extract_strided_slice %81 {offsets = [0, 8], sizes = [1, 8], strides = [1, 1]} : vector<1x16xf32> to vector<1x8xf32>
    %140 = vector.broadcast %139 : vector<1x8xf32> to vector<32x8xf32>
    %141 = arith.addf %138, %140 : vector<32x8xf32>
    %cst_38 = arith.constant 0.000000e+00 : f32
    %142 = vector.broadcast %cst_38 : f32 to vector<32x8xf32>
    %143 = arith.cmpf ogt, %141, %142 : vector<32x8xf32>
    %cst_39 = arith.constant 0.000000e+00 : f32
    %144 = vector.broadcast %cst_39 : f32 to vector<32x8xf32>
    %145 = arith.minimumf %141, %144 : vector<32x8xf32>
    %146 = math.exp %145 : vector<32x8xf32>
    %cst_40 = arith.constant 1.000000e+00 : f32
    %147 = vector.broadcast %cst_40 : f32 to vector<32x8xf32>
    %148 = arith.subf %146, %147 : vector<32x8xf32>
    %149 = arith.select %143, %141, %148 : vector<32x8xi1>, vector<32x8xf32>
    %150 = tpu.concatenate %115, %149 in 1 : vector<32x8xf32>, vector<32x8xf32> -> vector<32x16xf32>
    %c0_41 = arith.constant 0 : index
    %c0_42 = arith.constant 0 : index
    %151 = vector.load %arg7[%c0_41, %c0_42] : memref<16x8xf32, #tpu.memory_space<vmem>>, vector<16x8xf32>
    %cst_43 = arith.constant dense<0.000000e+00> : vector<32x8xf32>
    %152 = tpu.matmul %150, %151, %cst_43 {dimension_numbers = #tpu.dot_dimension_numbers<[1], [0], [0], [1], [0, 0, 1, 1], [], []>} : vector<32x16xf32>, vector<16x8xf32>, vector<32x8xf32> -> vector<32x8xf32>
    %153 = vector.extract_strided_slice %152 {offsets = [0, 0], sizes = [32, 2], strides = [1, 1]} : vector<32x8xf32> to vector<32x2xf32>
    %154 = vector.extract_strided_slice %152 {offsets = [0, 2], sizes = [32, 2], strides = [1, 1]} : vector<32x8xf32> to vector<32x2xf32>
    %155 = tpu.transpose %154, [1, 0] : vector<32x2xf32> -> vector<2x32xf32>
    %156 = vector.extract_strided_slice %152 {offsets = [0, 4], sizes = [32, 2], strides = [1, 1]} : vector<32x8xf32> to vector<32x2xf32>
    %157 = vector.extract_strided_slice %152 {offsets = [0, 6], sizes = [32, 2], strides = [1, 1]} : vector<32x8xf32> to vector<32x2xf32>
    %c0_44 = arith.constant 0 : index
    %c0_45 = arith.constant 0 : index
    %158 = vector.load %arg8[%c0_44, %c0_45] : memref<1x2xf32, #tpu.memory_space<vmem>>, vector<1x2xf32>
    %159 = vector.extract_strided_slice %156 {offsets = [0, 0], sizes = [32, 1], strides = [1, 1]} : vector<32x2xf32> to vector<32x1xf32>
    %160 = vector.extract_strided_slice %155 {offsets = [0, 0], sizes = [1, 32], strides = [1, 1]} : vector<2x32xf32> to vector<1x32xf32>
    %161 = vector.broadcast %159 : vector<32x1xf32> to vector<32x32xf32>
    %162 = vector.broadcast %160 : vector<1x32xf32> to vector<32x32xf32>
    %163 = arith.addf %161, %162 : vector<32x32xf32>
    %cst_46 = arith.constant 2.000000e-01 : f32
    %164 = vector.broadcast %cst_46 : f32 to vector<32x32xf32>
    %165 = arith.mulf %164, %163 : vector<32x32xf32>
    %166 = arith.maximumf %163, %165 : vector<32x32xf32>
    %167 = arith.addf %166, %2 : vector<32x32xf32>
    %cst_47 = arith.constant dense<0xFF800000> : vector<32xf32>
    %168 = vector.multi_reduction <maximumf>, %167, %cst_47 [1] : vector<32x32xf32> to vector<32xf32>
    %169 = vector.shape_cast %168 : vector<32xf32> to vector<32x1xf32>
    %170 = vector.broadcast %169 : vector<32x1xf32> to vector<32x32xf32>
    %171 = arith.subf %167, %170 : vector<32x32xf32>
    %172 = math.exp %171 : vector<32x32xf32>
    %cst_48 = arith.constant dense<0.000000e+00> : vector<32xf32>
    %173 = vector.multi_reduction <add>, %172, %cst_48 [1] : vector<32x32xf32> to vector<32xf32>
    %174 = vector.shape_cast %173 : vector<32xf32> to vector<32x1xf32>
    %175 = tpu.reciprocal %174 {approx = true} : vector<32x1xf32> -> vector<32x1xf32>
    %176 = vector.broadcast %175 : vector<32x1xf32> to vector<32x32xf32>
    %177 = arith.mulf %172, %176 : vector<32x32xf32>
    %178 = vector.extract_strided_slice %153 {offsets = [0, 0], sizes = [32, 1], strides = [1, 1]} : vector<32x2xf32> to vector<32x1xf32>
    %cst_49 = arith.constant dense<0.000000e+00> : vector<32x1xf32>
    %179 = tpu.matmul %177, %178, %cst_49 {dimension_numbers = #tpu.dot_dimension_numbers<[1], [0], [0], [1], [0, 0, 1, 1], [], []>} : vector<32x32xf32>, vector<32x1xf32>, vector<32x1xf32> -> vector<32x1xf32>
    %180 = vector.extract_strided_slice %157 {offsets = [0, 0], sizes = [32, 1], strides = [1, 1]} : vector<32x2xf32> to vector<32x1xf32>
    %181 = arith.addf %179, %180 : vector<32x1xf32>
    %182 = vector.extract_strided_slice %158 {offsets = [0, 0], sizes = [1, 1], strides = [1, 1]} : vector<1x2xf32> to vector<1x1xf32>
    %183 = vector.broadcast %182 : vector<1x1xf32> to vector<32x1xf32>
    %184 = arith.addf %181, %183 : vector<32x1xf32>
    %185 = vector.extract_strided_slice %156 {offsets = [0, 1], sizes = [32, 1], strides = [1, 1]} : vector<32x2xf32> to vector<32x1xf32>
    %186 = vector.extract_strided_slice %155 {offsets = [1, 0], sizes = [1, 32], strides = [1, 1]} : vector<2x32xf32> to vector<1x32xf32>
    %187 = vector.broadcast %185 : vector<32x1xf32> to vector<32x32xf32>
    %188 = vector.broadcast %186 : vector<1x32xf32> to vector<32x32xf32>
    %189 = arith.addf %187, %188 : vector<32x32xf32>
    %cst_50 = arith.constant 2.000000e-01 : f32
    %190 = vector.broadcast %cst_50 : f32 to vector<32x32xf32>
    %191 = arith.mulf %190, %189 : vector<32x32xf32>
    %192 = arith.maximumf %189, %191 : vector<32x32xf32>
    %193 = arith.addf %192, %2 : vector<32x32xf32>
    %cst_51 = arith.constant dense<0xFF800000> : vector<32xf32>
    %194 = vector.multi_reduction <maximumf>, %193, %cst_51 [1] : vector<32x32xf32> to vector<32xf32>
    %195 = vector.shape_cast %194 : vector<32xf32> to vector<32x1xf32>
    %196 = vector.broadcast %195 : vector<32x1xf32> to vector<32x32xf32>
    %197 = arith.subf %193, %196 : vector<32x32xf32>
    %198 = math.exp %197 : vector<32x32xf32>
    %cst_52 = arith.constant dense<0.000000e+00> : vector<32xf32>
    %199 = vector.multi_reduction <add>, %198, %cst_52 [1] : vector<32x32xf32> to vector<32xf32>
    %200 = vector.shape_cast %199 : vector<32xf32> to vector<32x1xf32>
    %201 = tpu.reciprocal %200 {approx = true} : vector<32x1xf32> -> vector<32x1xf32>
    %202 = vector.broadcast %201 : vector<32x1xf32> to vector<32x32xf32>
    %203 = arith.mulf %198, %202 : vector<32x32xf32>
    %204 = vector.extract_strided_slice %153 {offsets = [0, 1], sizes = [32, 1], strides = [1, 1]} : vector<32x2xf32> to vector<32x1xf32>
    %cst_53 = arith.constant dense<0.000000e+00> : vector<32x1xf32>
    %205 = tpu.matmul %203, %204, %cst_53 {dimension_numbers = #tpu.dot_dimension_numbers<[1], [0], [0], [1], [0, 0, 1, 1], [], []>} : vector<32x32xf32>, vector<32x1xf32>, vector<32x1xf32> -> vector<32x1xf32>
    %206 = vector.extract_strided_slice %157 {offsets = [0, 1], sizes = [32, 1], strides = [1, 1]} : vector<32x2xf32> to vector<32x1xf32>
    %207 = arith.addf %205, %206 : vector<32x1xf32>
    %208 = vector.extract_strided_slice %158 {offsets = [0, 1], sizes = [1, 1], strides = [1, 1]} : vector<1x2xf32> to vector<1x1xf32>
    %209 = vector.broadcast %208 : vector<1x1xf32> to vector<32x1xf32>
    %210 = arith.addf %207, %209 : vector<32x1xf32>
    %211 = tpu.concatenate %184, %210 in 1 : vector<32x1xf32>, vector<32x1xf32> -> vector<32x2xf32>
    %cst_54 = arith.constant 0.000000e+00 : f32
    %212 = vector.broadcast %cst_54 : f32 to vector<8x2xf32>
    %213 = vector.extract_strided_slice %211 {offsets = [0, 0], sizes = [8, 2], strides = [1, 1]} : vector<32x2xf32> to vector<8x2xf32>
    %c0_55 = arith.constant 0 : index
    %c0_56 = arith.constant 0 : index
    %c0_57 = arith.constant 0 : index
    %214 = vector.load %arg9[%c0_55, %c0_56, %c0_57] : memref<4x2x2xf32, #tpu.memory_space<vmem>>, vector<1x2x2xf32>
    %215 = vector.shape_cast %214 : vector<1x2x2xf32> to vector<2x2xf32>
    %cst_58 = arith.constant dense<0.000000e+00> : vector<8x2xf32>
    %216 = tpu.matmul %213, %215, %cst_58 {dimension_numbers = #tpu.dot_dimension_numbers<[1], [0], [0], [1], [0, 0, 1, 1], [], []>} : vector<8x2xf32>, vector<2x2xf32>, vector<8x2xf32> -> vector<8x2xf32>
    %217 = arith.addf %212, %216 : vector<8x2xf32>
    %218 = vector.extract_strided_slice %211 {offsets = [8, 0], sizes = [8, 2], strides = [1, 1]} : vector<32x2xf32> to vector<8x2xf32>
    %c1 = arith.constant 1 : index
    %c0_59 = arith.constant 0 : index
    %c0_60 = arith.constant 0 : index
    %219 = vector.load %arg9[%c1, %c0_59, %c0_60] : memref<4x2x2xf32, #tpu.memory_space<vmem>>, vector<1x2x2xf32>
    %220 = vector.shape_cast %219 : vector<1x2x2xf32> to vector<2x2xf32>
    %cst_61 = arith.constant dense<0.000000e+00> : vector<8x2xf32>
    %221 = tpu.matmul %218, %220, %cst_61 {dimension_numbers = #tpu.dot_dimension_numbers<[1], [0], [0], [1], [0, 0, 1, 1], [], []>} : vector<8x2xf32>, vector<2x2xf32>, vector<8x2xf32> -> vector<8x2xf32>
    %222 = arith.addf %217, %221 : vector<8x2xf32>
    %223 = vector.extract_strided_slice %211 {offsets = [16, 0], sizes = [8, 2], strides = [1, 1]} : vector<32x2xf32> to vector<8x2xf32>
    %c2 = arith.constant 2 : index
    %c0_62 = arith.constant 0 : index
    %c0_63 = arith.constant 0 : index
    %224 = vector.load %arg9[%c2, %c0_62, %c0_63] : memref<4x2x2xf32, #tpu.memory_space<vmem>>, vector<1x2x2xf32>
    %225 = vector.shape_cast %224 : vector<1x2x2xf32> to vector<2x2xf32>
    %cst_64 = arith.constant dense<0.000000e+00> : vector<8x2xf32>
    %226 = tpu.matmul %223, %225, %cst_64 {dimension_numbers = #tpu.dot_dimension_numbers<[1], [0], [0], [1], [0, 0, 1, 1], [], []>} : vector<8x2xf32>, vector<2x2xf32>, vector<8x2xf32> -> vector<8x2xf32>
    %227 = arith.addf %222, %226 : vector<8x2xf32>
    %228 = vector.extract_strided_slice %211 {offsets = [24, 0], sizes = [8, 2], strides = [1, 1]} : vector<32x2xf32> to vector<8x2xf32>
    %c3 = arith.constant 3 : index
    %c0_65 = arith.constant 0 : index
    %c0_66 = arith.constant 0 : index
    %229 = vector.load %arg9[%c3, %c0_65, %c0_66] : memref<4x2x2xf32, #tpu.memory_space<vmem>>, vector<1x2x2xf32>
    %230 = vector.shape_cast %229 : vector<1x2x2xf32> to vector<2x2xf32>
    %cst_67 = arith.constant dense<0.000000e+00> : vector<8x2xf32>
    %231 = tpu.matmul %228, %230, %cst_67 {dimension_numbers = #tpu.dot_dimension_numbers<[1], [0], [0], [1], [0, 0, 1, 1], [], []>} : vector<8x2xf32>, vector<2x2xf32>, vector<8x2xf32> -> vector<8x2xf32>
    %232 = arith.addf %227, %231 : vector<8x2xf32>
    %c0_68 = arith.constant 0 : index
    %c0_69 = arith.constant 0 : index
    %233 = vector.load %arg10[%c0_68, %c0_69] : memref<1x2xf32, #tpu.memory_space<vmem>>, vector<1x2xf32>
    %234 = vector.broadcast %233 : vector<1x2xf32> to vector<8x2xf32>
    %235 = arith.addf %232, %234 : vector<8x2xf32>
    %236 = vector.shape_cast %235 : vector<8x2xf32> to vector<1x8x2xf32>
    %cst_70 = arith.constant dense<0.000000e+00> : vector<1xf32>
    %237 = vector.multi_reduction <add>, %236, %cst_70 [1, 2] : vector<1x8x2xf32> to vector<1xf32>
    %238 = vector.shape_cast %237 : vector<1xf32> to vector<1x1x1xf32>
    %239 = vector.extract %238[0, 0, 0] : f32 from vector<1x1x1xf32>
    %cst_71 = arith.constant 1.600000e+01 : f32
    %240 = arith.divf %239, %cst_71 : f32
    %241 = vector.broadcast %240 : f32 to vector<8x2xf32>
    %242 = arith.subf %235, %241 : vector<8x2xf32>
    %243 = arith.mulf %242, %242 : vector<8x2xf32>
    %244 = vector.shape_cast %243 : vector<8x2xf32> to vector<1x8x2xf32>
    %cst_72 = arith.constant dense<0.000000e+00> : vector<1xf32>
    %245 = vector.multi_reduction <add>, %244, %cst_72 [1, 2] : vector<1x8x2xf32> to vector<1xf32>
    %246 = vector.shape_cast %245 : vector<1xf32> to vector<1x1x1xf32>
    %247 = vector.extract %246[0, 0, 0] : f32 from vector<1x1x1xf32>
    %cst_73 = arith.constant 1.600000e+01 : f32
    %248 = arith.divf %247, %cst_73 : f32
    %249 = vector.broadcast %240 : f32 to vector<8x2xf32>
    %250 = arith.subf %235, %249 : vector<8x2xf32>
    %cst_74 = arith.constant 9.99999974E-6 : f32
    %251 = arith.addf %248, %cst_74 : f32
    %252 = math.rsqrt %251 : f32
    %253 = vector.broadcast %252 : f32 to vector<8x2xf32>
    %254 = arith.mulf %250, %253 : vector<8x2xf32>
    %c0_75 = arith.constant 0 : index
    %c0_76 = arith.constant 0 : index
    %255 = vector.load %arg11[%c0_75, %c0_76] : memref<8x2xf32, #tpu.memory_space<vmem>>, vector<8x2xf32>
    %256 = arith.mulf %254, %255 : vector<8x2xf32>
    %c0_77 = arith.constant 0 : index
    %c0_78 = arith.constant 0 : index
    %257 = vector.load %arg12[%c0_77, %c0_78] : memref<8x2xf32, #tpu.memory_space<vmem>>, vector<8x2xf32>
    %258 = arith.addf %256, %257 : vector<8x2xf32>
    %c0_79 = arith.constant 0 : index
    %c0_80 = arith.constant 0 : index
    %259 = vector.load %arg13[%c0_79, %c0_80] : memref<2x1xf32, #tpu.memory_space<vmem>>, vector<2x1xf32>
    %cst_81 = arith.constant dense<0.000000e+00> : vector<8x1xf32>
    %260 = tpu.matmul %258, %259, %cst_81 {dimension_numbers = #tpu.dot_dimension_numbers<[1], [0], [0], [1], [0, 0, 1, 1], [], []>} : vector<8x2xf32>, vector<2x1xf32>, vector<8x1xf32> -> vector<8x1xf32>
    %c0_82 = arith.constant 0 : index
    %c0_83 = arith.constant 0 : index
    %261 = memref.load %arg17[%c0_82, %c0_83] : memref<1x1xf32, #tpu.memory_space<smem>>
    %262 = vector.broadcast %261 : f32 to vector<8x1xf32>
    %263 = arith.addf %260, %262 : vector<8x1xf32>
    %264 = vector.shape_cast %263 : vector<8x1xf32> to vector<1x8x1xf32>
    %cst_84 = arith.constant dense<0.000000e+00> : vector<1xf32>
    %265 = vector.multi_reduction <add>, %264, %cst_84 [1, 2] : vector<1x8x1xf32> to vector<1xf32>
    %266 = vector.shape_cast %265 : vector<1xf32> to vector<1x1x1xf32>
    %267 = vector.extract %266[0, 0, 0] : f32 from vector<1x1x1xf32>
    %cst_85 = arith.constant 8.000000e+00 : f32
    %268 = arith.divf %267, %cst_85 : f32
    %269 = vector.broadcast %268 : f32 to vector<8x1xf32>
    %270 = arith.subf %263, %269 : vector<8x1xf32>
    %271 = arith.mulf %270, %270 : vector<8x1xf32>
    %272 = vector.shape_cast %271 : vector<8x1xf32> to vector<1x8x1xf32>
    %cst_86 = arith.constant dense<0.000000e+00> : vector<1xf32>
    %273 = vector.multi_reduction <add>, %272, %cst_86 [1, 2] : vector<1x8x1xf32> to vector<1xf32>
    %274 = vector.shape_cast %273 : vector<1xf32> to vector<1x1x1xf32>
    %275 = vector.extract %274[0, 0, 0] : f32 from vector<1x1x1xf32>
    %cst_87 = arith.constant 8.000000e+00 : f32
    %276 = arith.divf %275, %cst_87 : f32
    %277 = vector.broadcast %268 : f32 to vector<8x1xf32>
    %278 = arith.subf %263, %277 : vector<8x1xf32>
    %cst_88 = arith.constant 9.99999974E-6 : f32
    %279 = arith.addf %276, %cst_88 : f32
    %280 = math.rsqrt %279 : f32
    %281 = vector.broadcast %280 : f32 to vector<8x1xf32>
    %282 = arith.mulf %278, %281 : vector<8x1xf32>
    %c0_89 = arith.constant 0 : index
    %c0_90 = arith.constant 0 : index
    %283 = vector.load %arg14[%c0_89, %c0_90] : memref<8x1xf32, #tpu.memory_space<vmem>>, vector<8x1xf32>
    %284 = arith.mulf %282, %283 : vector<8x1xf32>
    %c0_91 = arith.constant 0 : index
    %c0_92 = arith.constant 0 : index
    %285 = vector.load %arg15[%c0_91, %c0_92] : memref<8x1xf32, #tpu.memory_space<vmem>>, vector<8x1xf32>
    %286 = arith.addf %284, %285 : vector<8x1xf32>
    %c0_93 = arith.constant 0 : index
    %c0_94 = arith.constant 0 : index
    %287 = vector.load %arg16[%c0_93, %c0_94] : memref<8x3xf32, #tpu.memory_space<vmem>>, vector<8x3xf32>
    %288 = vector.broadcast %286 : vector<8x1xf32> to vector<8x3xf32>
    %289 = arith.mulf %288, %287 : vector<8x3xf32>
    %cst_95 = arith.constant dense<0.000000e+00> : vector<3xf32>
    %290 = vector.multi_reduction <add>, %289, %cst_95 [0] : vector<8x3xf32> to vector<3xf32>
    %291 = vector.shape_cast %290 : vector<3xf32> to vector<1x3xf32>
    %c0_96 = arith.constant 0 : index
    %c0_97 = arith.constant 0 : index
    %292 = memref.load %arg18[%c0_96, %c0_97] : memref<1x1xf32, #tpu.memory_space<smem>>
    %293 = vector.broadcast %292 : f32 to vector<1x3xf32>
    %294 = arith.addf %291, %293 : vector<1x3xf32>
    %c0_98 = arith.constant 0 : index
    %c0_99 = arith.constant 0 : index
    %c0_100 = arith.constant 0 : index
    %295 = vector.load %arg19[%c0_98, %c0_99, %c0_100] : memref<1x1x3xf32, #tpu.memory_space<vmem>>, vector<1x1x3xf32>
    %296 = vector.shape_cast %295 : vector<1x1x3xf32> to vector<1x3xf32>
    %297 = vector.shape_cast %294 : vector<1x3xf32> to vector<1x1x3xf32>
    tpu.vector_store %arg19[%c0_98, %c0_99, %c0_100], %297 {strides = array<i32>} : memref<1x1x3xf32, #tpu.memory_space<vmem>>, vector<1x1x3xf32>,
    return
  }
  func.func @transform_0(%arg0: i32) -> (i32, i32, i32) {
    %c0_i32 = arith.constant 0 : i32
    %c0_i32_0 = arith.constant 0 : i32
    %c0_i32_1 = arith.constant 0 : i32
    return %arg0, %c0_i32, %c0_i32_0 : i32, i32, i32
  }
  func.func @transform_1(%arg0: i32) -> (i32, i32) {
    %c0_i32 = arith.constant 0 : i32
    %c0_i32_0 = arith.constant 0 : i32
    %c0_i32_1 = arith.constant 0 : i32
    return %c0_i32, %c0_i32_0 : i32, i32
  }
  func.func @transform_2(%arg0: i32) -> (i32, i32) {
    %c0_i32 = arith.constant 0 : i32
    %c0_i32_0 = arith.constant 0 : i32
    %c0_i32_1 = arith.constant 0 : i32
    return %c0_i32, %c0_i32_0 : i32, i32
  }
  func.func @transform_3(%arg0: i32) -> (i32, i32) {
    %c0_i32 = arith.constant 0 : i32
    %c0_i32_0 = arith.constant 0 : i32
    %c0_i32_1 = arith.constant 0 : i32
    return %c0_i32, %c0_i32_0 : i32, i32
  }
  func.func @transform_4(%arg0: i32) -> (i32, i32) {
    %c0_i32 = arith.constant 0 : i32
    %c0_i32_0 = arith.constant 0 : i32
    %c0_i32_1 = arith.constant 0 : i32
    return %c0_i32, %c0_i32_0 : i32, i32
  }
  func.func @transform_5(%arg0: i32) -> (i32, i32) {
    %c0_i32 = arith.constant 0 : i32
    %c0_i32_0 = arith.constant 0 : i32
    %c0_i32_1 = arith.constant 0 : i32
    return %c0_i32, %c0_i32_0 : i32, i32
  }
  func.func @transform_6(%arg0: i32) -> (i32, i32) {
    %c0_i32 = arith.constant 0 : i32
    %c0_i32_0 = arith.constant 0 : i32
    %c0_i32_1 = arith.constant 0 : i32
    return %c0_i32, %c0_i32_0 : i32, i32
  }
  func.func @transform_7(%arg0: i32) -> (i32, i32) {
    %c0_i32 = arith.constant 0 : i32
    %c0_i32_0 = arith.constant 0 : i32
    %c0_i32_1 = arith.constant 0 : i32
    return %c0_i32, %c0_i32_0 : i32, i32
  }
  func.func @transform_8(%arg0: i32) -> (i32, i32, i32) {
    %c0_i32 = arith.constant 0 : i32
    %c0_i32_0 = arith.constant 0 : i32
    %c0_i32_1 = arith.constant 0 : i32
    %c0_i32_2 = arith.constant 0 : i32
    return %c0_i32, %c0_i32_0, %c0_i32_1 : i32, i32, i32
  }
  func.func @transform_9(%arg0: i32) -> (i32, i32) {
    %c0_i32 = arith.constant 0 : i32
    %c0_i32_0 = arith.constant 0 : i32
    %c0_i32_1 = arith.constant 0 : i32
    return %c0_i32, %c0_i32_0 : i32, i32
  }
  func.func @transform_10(%arg0: i32) -> (i32, i32) {
    %c0_i32 = arith.constant 0 : i32
    %c0_i32_0 = arith.constant 0 : i32
    %c0_i32_1 = arith.constant 0 : i32
    return %c0_i32, %c0_i32_0 : i32, i32
  }
  func.func @transform_11(%arg0: i32) -> (i32, i32) {
    %c0_i32 = arith.constant 0 : i32
    %c0_i32_0 = arith.constant 0 : i32
    %c0_i32_1 = arith.constant 0 : i32
    return %c0_i32, %c0_i32_0 : i32, i32
  }
  func.func @transform_12(%arg0: i32) -> (i32, i32) {
    %c0_i32 = arith.constant 0 : i32
    %c0_i32_0 = arith.constant 0 : i32
    %c0_i32_1 = arith.constant 0 : i32
    return %c0_i32, %c0_i32_0 : i32, i32
  }
  func.func @transform_13(%arg0: i32) -> (i32, i32) {
    %c0_i32 = arith.constant 0 : i32
    %c0_i32_0 = arith.constant 0 : i32
    %c0_i32_1 = arith.constant 0 : i32
    return %c0_i32, %c0_i32_0 : i32, i32
  }
  func.func @transform_14(%arg0: i32) -> (i32, i32) {
    %c0_i32 = arith.constant 0 : i32
    %c0_i32_0 = arith.constant 0 : i32
    %c0_i32_1 = arith.constant 0 : i32
    return %c0_i32, %c0_i32_0 : i32, i32
  }
  func.func @transform_15(%arg0: i32) -> (i32, i32) {
    %c0_i32 = arith.constant 0 : i32
    %c0_i32_0 = arith.constant 0 : i32
    %c0_i32_1 = arith.constant 0 : i32
    return %c0_i32, %c0_i32_0 : i32, i32
  }
  func.func @transform_16(%arg0: i32) -> (i32, i32) {
    %c0_i32 = arith.constant 0 : i32
    %c0_i32_0 = arith.constant 0 : i32
    %c0_i32_1 = arith.constant 0 : i32
    return %c0_i32, %c0_i32_0 : i32, i32
  }
  func.func @transform_17(%arg0: i32) -> (i32, i32) {
    %c0_i32 = arith.constant 0 : i32
    %c0_i32_0 = arith.constant 0 : i32
    %c0_i32_1 = arith.constant 0 : i32
    return %c0_i32, %c0_i32_0 : i32, i32
  }
  func.func @transform_18(%arg0: i32) -> (i32, i32, i32) {
    %c0_i32 = arith.constant 0 : i32
    %c0_i32_0 = arith.constant 0 : i32
    %c0_i32_1 = arith.constant 0 : i32
    return %arg0, %c0_i32, %c0_i32_0 : i32, i32, i32
  }
}

</mosaic_0001>

<bundles_post_ra>
// kernel: tpu_custom_call.1
= control target key start
LH: loop header
LB: loop body
LE: loop exit
PB: predicated region body
PF: predicated region fallthrough
CT: control target
= control target key end

     0   :  { %s3246_s0 = inlined_call_operand.vmem [shape: f32[2,32,4], index: 0, kind: input, shape index: {}]   ;;  %s3247_s1 = inlined_call_operand.vmem [shape: f32[32,32], index: 1, kind: input, shape index: {}]   ;;  %s3248_s2 = inlined_call_operand.vmem [shape: f32[4,20], index: 2, kind: input, shape index: {}]   ;;  %s3249_s3 = inlined_call_operand.vmem [shape: f32[1,16], index: 3, kind: input, shape index: {}]   ;;  %s3250_s4 = inlined_call_operand.vmem [shape: f32[16,20], index: 4, kind: input, shape index: {}]   ;;  %s3251_s5 = inlined_call_operand.vmem [shape: f32[1,16], index: 5, kind: input, shape index: {}]   ;;  %s3252_s6 = inlined_call_operand.vmem [shape: f32[16,8], index: 6, kind: input, shape index: {}]   ;;  %s3253_s7 = inlined_call_operand.vmem [shape: f32[1,2], index: 7, kind: input, shape index: {}]   ;;  %s3254_s8 = inlined_call_operand.vmem [shape: f32[4,2,2], index: 8, kind: input, shape index: {}]   ;;  %s3255_s9 = inlined_call_operand.vmem [shape: f32[1,2], index: 9, kind: input, shape index: {}]   ;;  %s3256_s10 = inlined_call_operand.vmem [shape: f32[8,2], index: 10, kind: input, shape index: {}]   ;;  %s3257_s11 = inlined_call_operand.vmem [shape: f32[8,2], index: 11, kind: input, shape index: {}]   ;;  %s3258_s12 = inlined_call_operand.vmem [shape: f32[2,1], index: 12, kind: input, shape index: {}]   ;;  %s3259_s13 = inlined_call_operand.vmem [shape: f32[8,1], index: 13, kind: input, shape index: {}]   ;;  %s3260_s14 = inlined_call_operand.vmem [shape: f32[8,1], index: 14, kind: input, shape index: {}]   ;;  %s3261_s15 = inlined_call_operand.vmem [shape: f32[8,3], index: 15, kind: input, shape index: {}]   ;;  %s3262_s16 = inlined_call_operand.<no memory space> [shape: f32[1,1], index: 16, kind: input, shape index: {}]   ;;  %s3263_s17 = inlined_call_operand.<no memory space> [shape: f32[1,1], index: 17, kind: input, shape index: {}]   ;;  %s3264_s18 = inlined_call_operand.hbm [shape: f32[2,1,3], index: 18, kind: output, shape index: {}]  }
   0x1   :  { %3266 = sst [smem:[#allocation8_spill]] %s3246_s0 }
   0x2   :  { %3267 = sst [smem:[#allocation9_spill]] %s3247_s1 }
   0x3   :  { %3268 = sst [smem:[#allocation10_spill]] %s3248_s2 }
   0x4   :  { %3269 = sst [smem:[#allocation11_spill]] %s3249_s3 }
   0x5   :  { %3270 = sst [smem:[#allocation12_spill]] %s3250_s4 }
   0x6   :  { %3271 = sst [smem:[#allocation13_spill]] %s3251_s5 }
   0x7   :  { %23 = sst [smem:[#allocation2]] %s3262_s16 }
   0x8   :  { %24 = sst [smem:[#allocation3]] %s3263_s17 }
   0x9   :  { %25 = vsyncpa [#allocation5], 0 }
   0xa   :  { %27 = vsyncpa [#allocation5 + $0x1], 0  ;;  %s2717_s0 = smov 0   ;;  %s2719_s19 = smov 0  }
   0xb   :  { %s2721_s1 = smov 0   ;;  %s2723_s20 = smov 0  }
   0xc LB: > { %s2738_s16 = sadd.s32 4294967295, %s2599_s20   ;;  %s2194_s17 = sadd.s32 4294967294, %s2599_s20   ;;  %s2599_s20 = sphi %s2723_s20, %s3285_s20   ;;  %s2595_s1 = sphi %s2721_s1, %s3284_s1   ;;  %s2591_s19 = sphi %s2719_s19, %s3283_s19   ;;  %s2587_s0 = sphi %s2717_s0, %s3282_s0  }
   0xd   : > { %s2742_s21 = sadd.s32 1, %s2599_s20   ;;  %s423_s22 = sadd.s32 1, %s2595_s1 }
   0xe   : > { %s420_s2 = ssub.s32 %s2599_s20, %s2742_s21  ;;  %p433_p0 = scmp.ne.s32.totalorder %s2595_s1, %s2591_s19 }
   0xf   : > { %p421_p1 = scmp.eq.s32.totalorder %s420_s2, 0  ;;  %p434_p2 = scmp.eq.s32.totalorder %s2738_s16, 1 }
  0x10   : > { %p439_p3 = scmp.ne.s32.totalorder %s2591_s19, %s2587_s0  ;;  %p440_p4 = scmp.eq.s32.totalorder %s2194_s17, 1 }
  0x11   : > { %s2753_s23 = scalar_select %p421_p1, %s2595_s1, %s423_s22  }
  0x12   : > { %p2755_p5 = por %p434_p2, %p433_p0  ;;  %p2759_p6 = por %p440_p4, %p439_p3 }
  0x13   : > { %3272 = sst [smem:[#allocation7_spill]] %s2753_s23  ;;  %p2197_p7 = scmp.ge.s32.totalorder %s2599_s20, 1 }
  0x14   : > { %p517_p8 = scmp.lt.s32.totalorder %s2599_s20, 3 }
  0x16   : > { %p518_p9 = pnand %p2197_p7, %p517_p8 }
  0x17   : > { %s3275_s28 = sld [smem:[#allocation10_spill]] (!%p518_p9)  ;;  %p570_p10 = scmp.lt.s32.totalorder (!%p518_p9), %s2738_s16, 1 }
  0x18   : > { %521 = sbr.rel (%p518_p9) target bundleno = 4244 (0x1094), region = 92  ;;  %s3276_s2 = sld [smem:[#allocation8_spill]] (!%p518_p9) }
  0x19   : > { %s2602_s26 = smov (!%p518_p9), 112   ;;  %s2604_s27 = smov (!%p518_p9), 120  }
  0x1a   : > { %s3278_s3 = sld [smem:[#allocation11_spill]] (!%p518_p9)  ;;  %s2605_s17 = smov (!%p518_p9), 8  }
  0x1b   : > { %s3279_s4 = sld [smem:[#allocation12_spill]] (!%p518_p9)  ;;  %s2610_s22 = smov (!%p518_p9), 121  }
  0x1c   : > { %s3280_s5 = sld [smem:[#allocation13_spill]] (!%p518_p9) }
  0x1d   : > { %v583_v0 = vld [vmem:[%s3275_s28] sm:$0xf]  ;;  %vm597_vm0 = vcmask 1043456   ;;  %s571_s29 = scalar_select %p570_p10, %s2738_s16, 1  ;;  %v2601_v1 = vmov 19   ;;  %vm584_vm1 = vcmask 31744  }
  0x1e   : > { %2200 = vmatpush.msk.msra.mxu0 %vm597_vm0, %v583_v0  ;;  %2269 = vmatpush.msk.msra.mxu2 %vm597_vm0, %v583_v0  ;;  %v2603_v11 = vmov 18   ;;  %s3277_s28 = sld [smem:[#allocation9_spill]]  ;;  %vm712_vm2 = vcmask 261120   ;;  %vm1005_vm8 = vcmask 130048   ;;  %vm998_vm9 = vcmask 64512  }
  0x1f   : > { %2341 = vset.pattern.permute.xlu2 %v2601_v1  ;;  %2345 = vset.pattern.permute.xlu0 %v2601_v1  ;;  %s2268_s30 = sshll.u32 %s571_s29, 5  ;;  %s2609_s29 = smov 127  }
  0x20   : > { %s574_s23 = scalar_lea.vmem %s3276_s2, %s2268_s30  ;;  %s2611_s2 = smov 122  }
  0x21   : > { %v575_v2 = vld [vmem:[%s574_s23] sm:$0xff]  ;;  %v578_v3 = vld [vmem:[%s574_s23 + $0x18] sm:$0xff]  ;;  %v576_v4 = vld [vmem:[%s574_s23 + $0x8] sm:$0xff] }
  0x22   : > { %2201 = vmatmul.msk.f32.vlgmr.msra.gmra.mxu0 %vm584_vm1, %v575_v2  ;;  %2204 = vmatmul.msk.f32.vlgmr.msra.gmra.mxu2 %vm584_vm1, %v578_v3  ;;  %v577_v5 = vld [vmem:[%s574_s23 + $0x10] sm:$0xff] }
  0x24   : > { %v2814_v33 = vld [vmem:[%s3277_s28 + $0x18] sm:$0xff]  ;;  %v2819_v34 = vld [vmem:[%s3277_s28 + $0x8] sm:$0xff]  ;;  %v2824_v35 = vld [vmem:[%s3277_s28] sm:$0xff] }
  0x25   : > { %v2835_v49 = vld [vmem:[%s3277_s28 + $0x10] sm:$0xff] }
  0x2a   : > { %2202 = vmatmul.msk.f32.gmra.mxu0 %vm584_vm1, %v576_v4 }
  0x32   : > { %2203 = vmatmul.msk.f32.gmra.mxu0 %vm584_vm1, %v577_v5 }
  0x9f   : > { %v2775_v6 = vpop.f32.mrf.mxu0 }
  0xa0   : > { %826 = vperm.xlu2 %2341, %v2775_v6   ;;  %634 = vrot.lane.b32.xlu0 %v2775_v6, %s2602_s26 }
  0xa5   : > { %v2780_v7 = vpop.f32.mrf.mxu2 }
  0xa6   : > { %640 = vrot.lane.b32.xlu1 %v2780_v7, %s2602_s26  ;;  %784 = vmatpush.msra.mxu1 %v2780_v7 }
  0xa7   : > { %v2785_v8 = vpop.f32.mrf.mxu0 }
  0xa8   : > { %838 = vperm.xlu2 %2341, %v2780_v7   ;;  %636 = vrot.lane.b32.xlu0 %v2785_v8, %s2602_s26  ;;  %v2352_v9 = vpack.i.bf16 %v2775_v6, %v2785_v8 }
  0xaf   : > { %v2792_v10 = vpop.f32.mrf.mxu0 }
  0xb0   : > { %2342 = vset.pattern.permute.xlu2 %v2603_v11  ;;  %834 = vperm.xlu0 %2345, %v2792_v10   ;;  %v2347_v54 = vpack.i.bf16 %v2792_v10, %v2780_v7 }
  0xb1   : > { %638 = vrot.lane.b32.xlu1 %v2792_v10, %s2602_s26  ;;  %785 = vmatpush.msra.mxu1 %v2792_v10 }
  0xb2   : > { %680 = vperm.xlu2 %2342, %v2775_v6  }
  0xb3   : > { %786 = vmatpush.msra.mxu1 %v2785_v8 }
  0xb5   : > { %787 = vmatpush.msra.mxu1 %v2775_v6 }
  0xb8   : > { %2346 = vset.pattern.permute.xlu0 %v2603_v11 }
  0xb9   : > { %688 = vperm.xlu0 %2346, %v2792_v10  }
  0xba   : > { %692 = vperm.xlu2 %2342, %v2780_v7  }
  0xc2   : > { %2343 = vset.pattern.permute.xlu2 %v2601_v1 }
  0xc3   : > { %830 = vperm.xlu2 %2343, %v2785_v8  }
  0xcb   : > { %2344 = vset.pattern.permute.xlu2 %v2603_v11 }
  0xcc   : > { %684 = vperm.xlu2 %2344, %v2785_v8  }
  0xd4   : > { %2357 = vset.pattern.permute.xlu2 %v2601_v1 }
  0xfa   : > { %v827_v16 = vpop.permute.xlu2 %826 }
 0x102   : > { %v839_v17 = vpop.permute.xlu2 %838 }
 0x10c   : > { %v681_v18 = vpop.permute.xlu2 %680 }
 0x112   : > { %v635_v12 = vpop.permute.xlu0 %634 }
 0x113   : > { %646 = vxpose.xlu1.b32.start [1/4] (short) (narrow) %v635_v12, 8 }
 0x114   : > { %v693_v19 = vpop.permute.xlu2 %692 }
 0x118   : > { %v641_v13 = vpop.permute.xlu1 %640 }
 0x11a   : > { %v637_v14 = vpop.permute.xlu0 %636 }
 0x11b   : > { %647 = vxpose.xlu1.b32.cont [2/4] (short) (narrow) %v637_v14, 8 }
 0x11d   : > { %v831_v23 = vpop.permute.xlu2 %830 }
 0x122   : > { %v835_v24 = vpop.permute.xlu0 %834 }
 0x123   : > { %v639_v15 = vpop.permute.xlu1 %638 }
 0x124   : > { %648 = vxpose.xlu1.b32.cont [3/4] (short) (narrow) %v639_v15, 8 }
 0x126   : > { %v685_v57 = vpop.permute.xlu2 %684 }
 0x12b   : > { %v689_v62 = vpop.permute.xlu0 %688 }
 0x12c   : > { %649 = vxpose.xlu1.b32.end [4/4] (short) (narrow) %v641_v13, 8 }
 0x17f   : > { %2360 = vset.pattern.permute.xlu1 %v2601_v1 }
 0x1b8   : > { %v662_v20 = vpop.trf.xlu1 }
 0x1b9   : > { %v695_v21 = vperm.slane %v662_v20, 0  ;;  %v841_v22 = vperm.slane %v662_v20, 1 }
 0x1bb   : > { %v845_v25 = vadd.f32 %v841_v22, %v839_v17  ;;  %v843_v26 = vadd.f32 %v841_v22, %v831_v23  ;;  %v842_v27 = vadd.f32 %v841_v22, %v827_v16  ;;  %v844_v28 = vadd.f32 %v841_v22, %v835_v24 }
 0x1bc   : > { %v699_v29 = vadd.f32 %v695_v21, %v693_v19  ;;  %v696_v55 = vadd.f32 %v695_v21, %v681_v18  ;;  %v697_v59 = vadd.f32 %v695_v21, %v685_v57  ;;  %v698_v2 = vadd.f32 %v695_v21, %v689_v62 }
 0x1bd   : > { %v849_v30 = vmul.f32 0.2, %v845_v25  ;;  %v847_v31 = vmul.f32 0.2, %v843_v26  ;;  %v846_v32 = vmul.f32 0.2, %v842_v27 }
 0x1be   : > { %v848_v36 = vmul.f32 0.2, %v844_v28  ;;  %v703_v40 = vmul.f32 0.2, %v699_v29  ;;  %v700_v56 = vmul.f32 0.2, %v696_v55 }
 0x1bf   : > { %v853_v37 = vmax.f32 %v845_v25, %v849_v30  ;;  %v851_v38 = vmax.f32 %v843_v26, %v847_v31  ;;  %v850_v39 = vmax.f32 %v842_v27, %v846_v32  ;;  %v701_v61 = vmul.f32 0.2, %v697_v59 }
 0x1c0   : > { %v852_v44 = vmax.f32 %v844_v28, %v848_v36  ;;  %v707_v48 = vmax.f32 %v699_v29, %v703_v40  ;;  %v704_v58 = vmax.f32 %v696_v55, %v700_v56  ;;  %v702_v4 = vmul.f32 0.2, %v698_v2 }
 0x1c1   : > { %v857_v41 = vadd.f32 %v853_v37, %v2814_v33  ;;  %v855_v42 = vadd.f32 %v851_v38, %v2819_v34  ;;  %v854_v43 = vadd.f32 %v850_v39, %v2824_v35  ;;  %v705_v0 = vmax.f32 %v697_v59, %v701_v61  ;;  %v2872_v61 = vld [vmem:[%s3278_s3] ss:$0 sm:$0xff] }
 0x1c2   : > { %v856_v50 = vadd.f32 %v852_v44, %v2835_v49  ;;  %v2839_v51 = vadd.f32 %v707_v48, %v2814_v33  ;;  %v708_v60 = vadd.f32 %v704_v58, %v2824_v35  ;;  %v706_v6 = vmax.f32 %v698_v2, %v702_v4 }
 0x1c3   : > { %v867_v45 = vsel %vm712_vm2, %v857_v41, -inf  ;;  %v861_v46 = vsel %vm712_vm2, %v855_v42, -inf  ;;  %v858_v47 = vsel %vm712_vm2, %v854_v43, -inf  ;;  %v709_v3 = vadd.f32 %v705_v0, %v2819_v34 }
 0x1c4   : > { %868 = vmax.xlane.f32.xlu1 %v867_v45  ;;  %862 = vmax.xlane.f32.xlu2 %v861_v46  ;;  %v864_v52 = vsel %vm712_vm2, %v856_v50, -inf  ;;  %v722_v53 = vsel %vm712_vm2, %v2839_v51, -inf  ;;  %v713_v63 = vsel %vm712_vm2, %v708_v60, -inf  ;;  %v710_v7 = vadd.f32 %v706_v6, %v2835_v49 }
 0x1c5   : > { %859 = vmax.xlane.f32.xlu0 %v858_v47  ;;  %v716_v5 = vsel %vm712_vm2, %v709_v3, -inf }
 0x1c6   : > { %v719_v8 = vsel %vm712_vm2, %v710_v7, -inf }
 0x1cc   : > { %865 = vmax.xlane.f32.xlu2 %v864_v52  ;;  %723 = vmax.xlane.f32.xlu1 %v722_v53 }
 0x1d9   : > { %2348 = vrot.lane.b32.xlu0 %v2347_v54, %s2604_s27 }
 0x1e4   : > { %2353 = vrot.lane.b32.xlu2 %v2352_v9, %s2604_s27 }
 0x20d   : > { %714 = vmax.xlane.f32.xlu2 %v713_v63 }
 0x215   : > { %717 = vmax.xlane.f32.xlu2 %v716_v5 }
 0x21d   : > { %720 = vmax.xlane.f32.xlu2 %v719_v8 }
 0x235   : > { %914 = vrot.lane.b32.xlu2 %v2872_v61, %s2604_s27 }
 0x237   : > { %v863_v9 = vpop.xlane.xlu2 %862  ;;  %v869_v15 = vpop.xlane.xlu1 %868 }
 0x238   : > { %v860_v10 = vpop.xlane.xlu0 %859  ;;  %v871_v13 = vsub.f32 %v855_v42, %v863_v9  ;;  %v873_v19 = vsub.f32 %v857_v41, %v869_v15 }
 0x239   : > { %v870_v12 = vsub.f32 %v854_v43, %v860_v10 }
 0x23a   : > { %v876_v16 = vmul.f32 1.442695, %v871_v13  ;;  %v880_v23 = vmul.f32 1.442695, %v873_v19 }
 0x23b   : > { %v874_v14 = vmul.f32 1.442695, %v870_v12 }
 0x23d   : > { %2397 = vpow2.f32 %v874_v14 }
 0x23e   : > { %2399 = vpow2.f32 %v876_v16 }
 0x23f   : > { %v866_v17 = vpop.xlane.xlu2 %865  ;;  %v724_v42 = vpop.xlane.xlu1 %723 }
 0x240   : > { %v872_v18 = vsub.f32 %v856_v50, %v866_v17  ;;  %v728_v46 = vsub.f32 %v2839_v51, %v724_v42 }
 0x242   : > { %v878_v20 = vmul.f32 1.442695, %v872_v18  ;;  %v735_v50 = vmul.f32 1.442695, %v728_v46 }
 0x243   : > { %v2398_v21 = vpop.eup %2397 }
 0x244   : > { %2401 = vpow2.f32 %v878_v20  ;;  %v882_v22 = vsel %vm712_vm2, %v2398_v21, 0.0  ;;  %v2400_v24 = vpop.eup %2399 }
 0x245   : > { %883 = vadd.xlane.f32.xlu0 %v882_v22  ;;  %2403 = vpow2.f32 %v880_v23  ;;  %v885_v30 = vsel %vm712_vm2, %v2400_v24, 0.0 }
 0x247   : > { %v2354_v29 = vpop.permute.xlu2 %2353 }
 0x248   : > { %v2355_v36 = vunpack.i.l.bf16 %v2354_v29  ;;  %v2356_v37 = vunpack.i.h.bf16 %v2354_v29 }
 0x24a   : > { %v2858_v25 = vpop.eup %2401 }
 0x24b   : > { %v2349_v26 = vpop.permute.xlu0 %2348  ;;  %v888_v27 = vsel %vm712_vm2, %v2858_v25, 0.0  ;;  %v2404_v32 = vpop.eup %2403 }
 0x24c   : > { %889 = vadd.xlane.f32.xlu1 %v888_v27  ;;  %v2350_v28 = vunpack.i.l.bf16 %v2349_v26  ;;  %v2351_v31 = vunpack.i.h.bf16 %v2349_v26  ;;  %v891_v38 = vsel %vm712_vm2, %v2404_v32, 0.0 }
 0x24d   : > { %886 = vadd.xlane.f32.xlu0 %v885_v30 }
 0x24e   : > { %941 = vmatpush.msrb.mxu2 %v2350_v28 }
 0x250   : > { %942 = vmatpush.msrb.mxu2 %v2351_v31 }
 0x252   : > { %943 = vmatpush.msrb.mxu2 %v2355_v36 }
 0x254   : > { %944 = vmatpush.msrb.mxu2 %v2356_v37  ;;  %892 = vadd.xlane.f32.xlu1 %v891_v38 }
 0x280   : > { %v715_v39 = vpop.xlane.xlu2 %714 }
 0x281   : > { %v725_v40 = vsub.f32 %v708_v60, %v715_v39 }
 0x283   : > { %v729_v41 = vmul.f32 1.442695, %v725_v40 }
 0x285   : > { %2405 = vpow2.f32 %v729_v41 }
 0x288   : > { %v718_v43 = vpop.xlane.xlu2 %717 }
 0x289   : > { %v726_v44 = vsub.f32 %v709_v3, %v718_v43 }
 0x28b   : > { %v2406_v45 = vpop.eup %2405  ;;  %v731_v47 = vmul.f32 1.442695, %v726_v44 }
 0x28c   : > { %v737_v48 = vsel %vm712_vm2, %v2406_v45, 0.0 }
 0x28d   : > { %2407 = vpow2.f32 %v731_v47  ;;  %738 = vadd.xlane.f32.xlu1 %v737_v48 }
 0x28e   : > { %2409 = vpow2.f32 %v735_v50 }
 0x290   : > { %v721_v52 = vpop.xlane.xlu2 %720 }
 0x291   : > { %v727_v53 = vsub.f32 %v710_v7, %v721_v52 }
 0x293   : > { %v2408_v54 = vpop.eup %2407  ;;  %v733_v55 = vmul.f32 1.442695, %v727_v53 }
 0x294   : > { %v740_v56 = vsel %vm712_vm2, %v2408_v54, 0.0  ;;  %v2410_v57 = vpop.eup %2409 }
 0x295   : > { %2411 = vpow2.f32 %v733_v55  ;;  %741 = vadd.xlane.f32.xlu0 %v740_v56  ;;  %v746_v59 = vsel %vm712_vm2, %v2410_v57, 0.0 }
 0x298   : > { %v915_v23 = vpop.permute.xlu2 %914 }
 0x29b   : > { %v2412_v58 = vpop.eup %2411 }
 0x29c   : > { %v743_v51 = vsel %vm712_vm2, %v2412_v58, 0.0 }
 0x29d   : > { %747 = vadd.xlane.f32.xlu0 %v746_v59  ;;  %744 = vadd.xlane.f32.xlu1 %v743_v51  ;;  %v1003_v59 = vld [vmem:[%s3279_s4] sm:$0xff] }
 0x2b8   : > { %v884_v60 = vpop.xlane.xlu0 %883 }
 0x2b9   : > { %2413 = vrcp.f32 %v884_v60 }
 0x2bf   : > { %v2414_v62 = vpop.eup %2413  ;;  %v890_v2 = vpop.xlane.xlu1 %889 }
 0x2c0   : > { %v887_v63 = vpop.xlane.xlu0 %886  ;;  %v898_v0 = vmul.f32 %v2414_v62, %v2398_v21 }
 0x2c1   : > { %2415 = vrcp.f32 %v887_v63 }
 0x2c2   : > { %2213 = vmatmul.msk.f32.vlgmr.msrb.gmra.mxu2 %vm712_vm2, %v898_v0  ;;  %2417 = vrcp.f32 %v890_v2 }
 0x2c7   : > { %v2416_v3 = vpop.eup %2415  ;;  %v893_v5 = vpop.xlane.xlu1 %892 }
 0x2c8   : > { %v899_v4 = vmul.f32 %v2416_v3, %v2400_v24  ;;  %v2418_v6 = vpop.eup %2417  ;;  %2419 = vrcp.f32 %v893_v5 }
 0x2c9   : > { %v900_v7 = vmul.f32 %v2418_v6, %v2858_v25 }
 0x2ca   : > { %2214 = vmatmul.msk.f32.gmra.mxu2 %vm712_vm2, %v899_v4 }
 0x2ce   : > { %v2420_v8 = vpop.eup %2419 }
 0x2cf   : > { %v901_v9 = vmul.f32 %v2420_v8, %v2404_v32 }
 0x2d2   : > { %2215 = vmatmul.msk.f32.gmra.mxu2 %vm712_vm2, %v900_v7 }
 0x2da   : > { %2216 = vmatmul.msk.f32.gmra.mxu2 %vm712_vm2, %v901_v9 }
 0x300   : > { %v739_v10 = vpop.xlane.xlu1 %738 }
 0x301   : > { %2421 = vrcp.f32 %v739_v10 }
 0x307   : > { %v2422_v12 = vpop.eup %2421 }
 0x308   : > { %v742_v13 = vpop.xlane.xlu0 %741  ;;  %v753_v14 = vmul.f32 %v2422_v12, %v2406_v45 }
 0x309   : > { %2423 = vrcp.f32 %v742_v13 }
 0x30a   : > { %2205 = vmatmul.msk.f32.vlgmr.msra.gmra.mxu1 %vm712_vm2, %v753_v14 }
 0x30f   : > { %v2424_v15 = vpop.eup %2423 }
 0x310   : > { %v745_v16 = vpop.xlane.xlu1 %744  ;;  %v754_v17 = vmul.f32 %v2424_v15, %v2408_v54  ;;  %v748_v18 = vpop.xlane.xlu0 %747 }
 0x311   : > { %2425 = vrcp.f32 %v745_v16 }
 0x312   : > { %2206 = vmatmul.msk.f32.gmra.mxu1 %vm712_vm2, %v754_v17  ;;  %2427 = vrcp.f32 %v748_v18 }
 0x317   : > { %v2426_v19 = vpop.eup %2425 }
 0x318   : > { %v755_v20 = vmul.f32 %v2426_v19, %v2412_v58  ;;  %v2428_v21 = vpop.eup %2427 }
 0x319   : > { %v756_v22 = vmul.f32 %v2428_v21, %v2410_v57  ;;  %v1004_v57 = vld [vmem:[%s3279_s4 + $0x8] sm:$0xff] }
 0x31a   : > { %2207 = vmatmul.msk.f32.gmra.mxu1 %vm712_vm2, %v755_v20  ;;  %1032 = vmatpush.msra.mxu3 %v1004_v57 }
 0x31c   : > { %1033 = vmatpush.msra.mxu3 %v1003_v59 }
 0x322   : > { %2208 = vmatmul.msk.f32.gmra.mxu1 %vm712_vm2, %v756_v22 }
 0x345   : > { %v946_v24 = vpop.f32.mrf.mxu2 }
 0x346   : > { %v947_v25 = vadd.f32 %v946_v24, %v915_v23 }
 0x348   : > { %v962_v26 = vmin.f32 %v947_v25, 0.0  ;;  %vm958_vm3 = vcmp.gt.f32.partialorder %v947_v25, 0.0 }
 0x34a   : > { %v966_v27 = vmul.f32 1.442695, %v962_v26 }
 0x34c   : > { %2429 = vpow2.f32 %v966_v27 }
 0x34d   : > { %v949_v28 = vpop.f32.mrf.mxu2 }
 0x34e   : > { %v950_v29 = vadd.f32 %v949_v28, %v915_v23 }
 0x350   : > { %v963_v30 = vmin.f32 %v950_v29, 0.0  ;;  %vm959_vm4 = vcmp.gt.f32.partialorder %v950_v29, 0.0 }
 0x352   : > { %v2430_v31 = vpop.eup %2429  ;;  %v968_v32 = vmul.f32 1.442695, %v963_v30 }
 0x353   : > { %v2217_v36 = vadd.f32 -1.0, %v2430_v31 }
 0x354   : > { %2431 = vpow2.f32 %v968_v32 }
 0x355   : > { %v952_v37 = vpop.f32.mrf.mxu2  ;;  %v978_v38 = vsel %vm958_vm3, %v947_v25, %v2217_v36 }
 0x356   : > { %v953_v39 = vadd.f32 %v952_v37, %v915_v23  ;;  %986 = vrot.lane.b32.xlu1 %v978_v38, %s2605_s17 }
 0x358   : > { %v964_v40 = vmin.f32 %v953_v39, 0.0  ;;  %vm960_vm5 = vcmp.gt.f32.partialorder %v953_v39, 0.0 }
 0x35a   : > { %v2432_v41 = vpop.eup %2431  ;;  %v970_v42 = vmul.f32 1.442695, %v964_v40 }
 0x35b   : > { %v2218_v43 = vadd.f32 -1.0, %v2432_v41 }
 0x35c   : > { %2433 = vpow2.f32 %v970_v42 }
 0x35d   : > { %v955_v44 = vpop.f32.mrf.mxu2  ;;  %v979_v45 = vsel %vm959_vm4, %v950_v29, %v2218_v43 }
 0x35e   : > { %v956_v46 = vadd.f32 %v955_v44, %v915_v23  ;;  %988 = vrot.lane.b32.xlu0 %v979_v45, %s2605_s17 }
 0x360   : > { %v965_v47 = vmin.f32 %v956_v46, 0.0  ;;  %vm961_vm6 = vcmp.gt.f32.partialorder %v956_v46, 0.0 }
 0x362   : > { %v2434_v48 = vpop.eup %2433  ;;  %v972_v50 = vmul.f32 1.442695, %v965_v47 }
 0x363   : > { %v2219_v52 = vadd.f32 -1.0, %v2434_v48 }
 0x364   : > { %2435 = vpow2.f32 %v972_v50 }
 0x365   : > { %v980_v53 = vsel %vm960_vm5, %v953_v39, %v2219_v52 }
 0x366   : > { %990 = vrot.lane.b32.xlu2 %v980_v53, %s2605_s17 }
 0x36a   : > { %v2436_v54 = vpop.eup %2435 }
 0x36b   : > { %v2220_v55 = vadd.f32 -1.0, %v2436_v54 }
 0x36d   : > { %v981_v56 = vsel %vm961_vm6, %v956_v46, %v2220_v55  ;;  %vm1832_vm6 = vcmask 7168  }
 0x36e   : > { %992 = vrot.lane.b32.xlu0 %v981_v56, %s2605_s17 }
 0x387   : > { %v789_v58 = vpop.f32.mrf.mxu1 }
 0x388   : > { %v790_v51 = vadd.f32 %v2872_v61, %v789_v58 }
 0x38a   : > { %v805_v62 = vmin.f32 %v790_v51, 0.0  ;;  %vm801_vm7 = vcmp.gt.f32.partialorder %v790_v51, 0.0 }
 0x38c   : > { %v809_v63 = vmul.f32 1.442695, %v805_v62 }
 0x38e   : > { %2437 = vpow2.f32 %v809_v63 }
 0x38f   : > { %v792_v60 = vpop.f32.mrf.mxu1 }
 0x390   : > { %v793_v0 = vadd.f32 %v2872_v61, %v792_v60 }
 0x392   : > { %v806_v3 = vmin.f32 %v793_v0, 0.0  ;;  %vm802_vm10 = vcmp.gt.f32.partialorder %v793_v0, 0.0 }
 0x394   : > { %v811_v4 = vmul.f32 1.442695, %v806_v3  ;;  %v2438_v6 = vpop.eup %2437 }
 0x395   : > { %v2209_v8 = vadd.f32 -1.0, %v2438_v6 }
 0x396   : > { %2439 = vpow2.f32 %v811_v4 }
 0x397   : > { %v795_v2 = vpop.f32.mrf.mxu1  ;;  %v821_v14 = vsel %vm801_vm7, %v790_v51, %v2209_v8  ;;  %vm1840_vm7 = vcmask 15360  }
 0x398   : > { %v796_v5 = vadd.f32 %v2872_v61, %v795_v2 }
 0x39a   : > { %v807_v7 = vmin.f32 %v796_v5, 0.0  ;;  %vm803_vm11 = vcmp.gt.f32.partialorder %v796_v5, 0.0 }
 0x39c   : > { %v813_v10 = vmul.f32 1.442695, %v807_v7  ;;  %v2440_v15 = vpop.eup %2439 }
 0x39d   : > { %v2210_v18 = vadd.f32 -1.0, %v2440_v15 }
 0x39e   : > { %2441 = vpow2.f32 %v813_v10 }
 0x39f   : > { %v798_v9 = vpop.f32.mrf.mxu1  ;;  %v822_v21 = vsel %vm802_vm10, %v793_v0, %v2210_v18 }
 0x3a0   : > { %v799_v12 = vadd.f32 %v2872_v61, %v798_v9 }
 0x3a2   : > { %v808_v17 = vmin.f32 %v799_v12, 0.0  ;;  %vm804_vm12 = vcmp.gt.f32.partialorder %v799_v12, 0.0 }
 0x3a4   : > { %v815_v19 = vmul.f32 1.442695, %v808_v17  ;;  %v2442_v22 = vpop.eup %2441 }
 0x3a5   : > { %v2211_v23 = vadd.f32 -1.0, %v2442_v22 }
 0x3a6   : > { %2443 = vpow2.f32 %v815_v19 }
 0x3a7   : > { %v823_v25 = vsel %vm803_vm11, %v796_v5, %v2211_v23 }
 0x3ac   : > { %v2444_v26 = vpop.eup %2443 }
 0x3ad   : > { %v2212_v28 = vadd.f32 -1.0, %v2444_v26 }
 0x3af   : > { %v824_v30 = vsel %vm804_vm12, %v799_v12, %v2212_v28 }
 0x3c0   : > { %v991_v24 = vpop.permute.xlu2 %990 }
 0x3c1   : > { %v2910_v27 = vsel %vm998_vm9, %v823_v25, %v991_v24 }
 0x3c8   : > { %v987_v13 = vpop.permute.xlu1 %986 }
 0x3c9   : > { %v2900_v16 = vsel %vm998_vm9, %v821_v14, %v987_v13 }
 0x3ca   : > { %2221 = vmatmul.msk.f32.vlgmr.msra.gmra.mxu3 %vm1005_vm8, %v2900_v16 }
 0x3d0   : > { %v989_v20 = vpop.permute.xlu0 %988 }
 0x3d1   : > { %v2905_v61 = vsel %vm998_vm9, %v822_v21, %v989_v20 }
 0x3d2   : > { %2222 = vmatmul.msk.f32.gmra.mxu3 %vm1005_vm8, %v2905_v61 }
 0x3da   : > { %2223 = vmatmul.msk.f32.gmra.mxu3 %vm1005_vm8, %v2910_v27 }
 0x3e0   : > { %v993_v29 = vpop.permute.xlu0 %992 }
 0x3e1   : > { %v2915_v31 = vsel %vm998_vm9, %v824_v30, %v993_v29 }
 0x3e2   : > { %2224 = vmatmul.msk.f32.gmra.mxu3 %vm1005_vm8, %v2915_v31 }
 0x44d   : > { %v2919_v32 = vpop.f32.mrf.mxu3 }
 0x44e   : > { %1097 = vperm.xlu0 %2346, %v2919_v32   ;;  %1246 = vperm.xlu2 %2357, %v2919_v32  }
 0x44f   : > { %1051 = vrot.lane.b32.xlu1 %v2919_v32, %s2602_s26 }
 0x455   : > { %v2925_v36 = vpop.f32.mrf.mxu3 }
 0x456   : > { %2358 = vset.pattern.permute.xlu0 %v2601_v1  ;;  %1053 = vrot.lane.b32.xlu2 %v2925_v36, %s2602_s26  ;;  %v2368_v37 = vpack.i.bf16 %v2919_v32, %v2925_v36 }
 0x457   : > { %1250 = vperm.xlu0 %2358, %v2925_v36  }
 0x45d   : > { %v2933_v38 = vpop.f32.mrf.mxu3 }
 0x45e   : > { %1254 = vperm.xlu1 %2360, %v2933_v38  }
 0x45f   : > { %2359 = vset.pattern.permute.xlu0 %v2603_v11 }
 0x460   : > { %1101 = vperm.xlu0 %2359, %v2925_v36  }
 0x465   : > { %v2938_v39 = vpop.f32.mrf.mxu3 }
 0x466   : > { %1057 = vrot.lane.b32.xlu1 %v2938_v39, %s2602_s26  ;;  %1197 = vmatpush.msrb.mxu0 %v2938_v39 }
 0x467   : > { %2361 = vset.pattern.permute.xlu1 %v2603_v11 }
 0x468   : > { %1055 = vrot.lane.b32.xlu0 %v2933_v38, %s2602_s26  ;;  %1198 = vmatpush.msrb.mxu0 %v2933_v38 }
 0x46a   : > { %1199 = vmatpush.msrb.mxu0 %v2925_v36 }
 0x46c   : > { %1200 = vmatpush.msrb.mxu0 %v2919_v32 }
 0x46e   : > { %1105 = vperm.xlu1 %2361, %v2933_v38  }
 0x476   : > { %2362 = vset.pattern.permute.xlu1 %v2601_v1 }
 0x477   : > { %1258 = vperm.xlu1 %2362, %v2938_v39  }
 0x4a8   : > { %v1247_v40 = vpop.permute.xlu2 %1246 }
 0x4b0   : > { %v1054_v11 = vpop.permute.xlu2 %1053 }
 0x4c0   : > { %v1098_v41 = vpop.permute.xlu0 %1097 }
 0x4c1   : > { %v1052_v42 = vpop.permute.xlu1 %1051 }
 0x4c2   : > { %1063 = vxpose.xlu2.b32.start [1/4] (short) (narrow) %v1052_v42, 8 }
 0x4c9   : > { %v1251_v43 = vpop.permute.xlu0 %1250 }
 0x4ca   : > { %1064 = vxpose.xlu2.b32.cont [2/4] (short) (narrow) %v1054_v11, 8 }
 0x4d0   : > { %v1255_v45 = vpop.permute.xlu1 %1254 }
 0x4d2   : > { %v1102_v44 = vpop.permute.xlu0 %1101 }
 0x4d8   : > { %v1058_v47 = vpop.permute.xlu1 %1057 }
 0x4da   : > { %v1056_v46 = vpop.permute.xlu0 %1055 }
 0x4db   : > { %1065 = vxpose.xlu2.b32.cont [3/4] (short) (narrow) %v1056_v46, 8 }
 0x4e0   : > { %v2952_v48 = vpop.permute.xlu1 %1105 }
 0x4e3   : > { %1066 = vxpose.xlu2.b32.end [4/4] (short) (narrow) %v1058_v47, 8 }
 0x4e9   : > { %v1259_v1 = vpop.permute.xlu1 %1258 }
 0x564   : > { %v1079_v50 = vpop.trf.xlu2 }
 0x565   : > { %v1261_v52 = vperm.slane %v1079_v50, 1  ;;  %v2954_v63 = vperm.slane %v1079_v50, 0 }
 0x567   : > { %v1264_v53 = vadd.f32 %v1261_v52, %v1255_v45  ;;  %v1263_v54 = vadd.f32 %v1261_v52, %v1251_v43  ;;  %v1262_v55 = vadd.f32 %v1261_v52, %v1247_v40  ;;  %v1265_v56 = vadd.f32 %v1261_v52, %v1259_v1 }
 0x568   : > { %v1114_v9 = vadd.f32 %v2954_v63, %v1102_v44  ;;  %v1113_v18 = vadd.f32 %v2954_v63, %v1098_v41 }
 0x569   : > { %v1268_v57 = vmul.f32 0.2, %v1264_v53  ;;  %v1267_v58 = vmul.f32 0.2, %v1263_v54  ;;  %v1266_v59 = vmul.f32 0.2, %v1262_v55 }
 0x56a   : > { %v1269_v0 = vmul.f32 0.2, %v1265_v56  ;;  %v1118_v12 = vmul.f32 0.2, %v1114_v9  ;;  %v1117_v19 = vmul.f32 0.2, %v1113_v18 }
 0x56b   : > { %v1272_v51 = vmax.f32 %v1264_v53, %v1268_v57  ;;  %v1271_v60 = vmax.f32 %v1263_v54, %v1267_v58  ;;  %v1270_v62 = vmax.f32 %v1262_v55, %v1266_v59 }
 0x56c   : > { %v1273_v8 = vmax.f32 %v1265_v56, %v1269_v0  ;;  %v1122_v14 = vmax.f32 %v1114_v9, %v1118_v12  ;;  %v1121_v20 = vmax.f32 %v1113_v18, %v1117_v19  ;;  %v1115_v0 = vadd.f32 %v2954_v63, %v2952_v48 }
 0x56d   : > { %v1276_v2 = vadd.f32 %v1272_v51, %v2835_v49  ;;  %v1275_v3 = vadd.f32 %v1271_v60, %v2819_v34  ;;  %v1274_v4 = vadd.f32 %v1270_v62, %v2824_v35 }
 0x56e   : > { %v1277_v10 = vadd.f32 %v1273_v8, %v2814_v33  ;;  %v1126_v15 = vadd.f32 %v1122_v14, %v2819_v34  ;;  %v1125_v21 = vadd.f32 %v1121_v20, %v2824_v35 }
 0x56f   : > { %v1284_v5 = vsel %vm712_vm2, %v1276_v2, -inf  ;;  %v1281_v6 = vsel %vm712_vm2, %v1275_v3, -inf  ;;  %v1278_v7 = vsel %vm712_vm2, %v1274_v4, -inf }
 0x570   : > { %1285 = vmax.xlane.f32.xlu2 %v1284_v5  ;;  %1282 = vmax.xlane.f32.xlu0 %v1281_v6  ;;  %v1287_v13 = vsel %vm712_vm2, %v1277_v10, -inf  ;;  %v1132_v17 = vsel %vm712_vm2, %v1126_v15, -inf  ;;  %v1129_v22 = vsel %vm712_vm2, %v1125_v21, -inf }
 0x571   : > { %1279 = vmax.xlane.f32.xlu1 %v1278_v7 }
 0x579   : > { %1288 = vmax.xlane.f32.xlu1 %v1287_v13 }
 0x581   : > { %1133 = vmax.xlane.f32.xlu1 %v1132_v17 }
 0x584   : > { %1109 = vperm.xlu0 %2359, %v2938_v39  }
 0x5ae   : > { %1130 = vmax.xlane.f32.xlu0 %v1129_v22 }
 0x5c2   : > { %2369 = vrot.lane.b32.xlu0 %v2368_v37, %s2604_s27 }
 0x5e3   : > { %v1283_v34 = vpop.xlane.xlu0 %1282  ;;  %v1286_v36 = vpop.xlane.xlu2 %1285 }
 0x5e4   : > { %v1291_v23 = vsub.f32 %v1275_v3, %v1283_v34  ;;  %v1280_v24 = vpop.xlane.xlu1 %1279  ;;  %v1292_v42 = vsub.f32 %v1276_v2, %v1286_v36 }
 0x5e5   : > { %v1290_v25 = vsub.f32 %v1274_v4, %v1280_v24 }
 0x5e6   : > { %v1296_v26 = vmul.f32 1.442695, %v1291_v23  ;;  %v1298_v46 = vmul.f32 1.442695, %v1292_v42 }
 0x5e7   : > { %v1294_v28 = vmul.f32 1.442695, %v1290_v25 }
 0x5e8   : > { %2445 = vpow2.f32 %v1296_v26 }
 0x5e9   : > { %2447 = vpow2.f32 %v1294_v28 }
 0x5ec   : > { %v1289_v29 = vpop.xlane.xlu1 %1288 }
 0x5ed   : > { %v1293_v52 = vsub.f32 %v1277_v10, %v1289_v29 }
 0x5ee   : > { %v2975_v30 = vpop.eup %2445 }
 0x5ef   : > { %v2977_v35 = vpop.eup %2447  ;;  %v1305_v40 = vsel %vm712_vm2, %v2975_v30, 0.0  ;;  %v1300_v55 = vmul.f32 1.442695, %v1293_v52 }
 0x5f0   : > { %1306 = vadd.xlane.f32.xlu0 %v1305_v40  ;;  %v1302_v32 = vsel %vm712_vm2, %v2977_v35, 0.0 }
 0x5f1   : > { %1303 = vadd.xlane.f32.xlu1 %v1302_v32 }
 0x5f4   : > { %v1134_v37 = vpop.xlane.xlu1 %1133 }
 0x5f5   : > { %v1142_v41 = vsub.f32 %v1126_v15, %v1134_v37 }
 0x5f6   : > { %v1110_v11 = vpop.permute.xlu0 %1109 }
 0x5f7   : > { %v1147_v43 = vmul.f32 1.442695, %v1142_v41  ;;  %v1116_v44 = vadd.f32 %v2954_v63, %v1110_v11 }
 0x5f9   : > { %2449 = vpow2.f32 %v1147_v43  ;;  %v1120_v45 = vmul.f32 0.2, %v1116_v44  ;;  %v3020_v43 = vld [vmem:[%s3280_s5] ss:$0 sm:$0xff] }
 0x5fa   : > { %2451 = vpow2.f32 %v1298_v46 }
 0x5fb   : > { %v1124_v47 = vmax.f32 %v1116_v44, %v1120_v45  ;;  %2453 = vpow2.f32 %v1300_v55  ;;  %v1439_v55 = vld [vmem:[%s3252_s6 + $0x8] sm:$0xff] }
 0x5fc   : > { %1466 = vmatpush.msrb.mxu1 %v1439_v55 }
 0x5fd   : > { %v1128_v50 = vadd.f32 %v1124_v47, %v2814_v33  ;;  %v2363_v33 = vpack.i.bf16 %v2933_v38, %v2938_v39  ;;  %v1119_v38 = vmul.f32 0.2, %v1115_v0 }
 0x5ff   : > { %v2985_v1 = vpop.eup %2449  ;;  %v1138_v53 = vsel %vm712_vm2, %v1128_v50, -inf  ;;  %v1123_v2 = vmax.f32 %v1115_v0, %v1119_v38 }
 0x600   : > { %1139 = vmax.xlane.f32.xlu2 %v1138_v53  ;;  %v1156_v54 = vsel %vm712_vm2, %v2985_v1, 0.0  ;;  %v2452_v56 = vpop.eup %2451 }
 0x601   : > { %1157 = vadd.xlane.f32.xlu0 %v1156_v54  ;;  %v1308_v57 = vsel %vm712_vm2, %v2452_v56, 0.0  ;;  %v2454_v58 = vpop.eup %2453  ;;  %v1127_v4 = vadd.f32 %v1123_v2, %v2835_v49 }
 0x602   : > { %v1311_v59 = vsel %vm712_vm2, %v2454_v58, 0.0 }
 0x603   : > { %v1135_v5 = vsel %vm712_vm2, %v1127_v4, -inf }
 0x608   : > { %1309 = vadd.xlane.f32.xlu2 %v1308_v57 }
 0x60a   : > { %2364 = vrot.lane.b32.xlu1 %v2363_v33, %s2604_s27 }
 0x610   : > { %1312 = vadd.xlane.f32.xlu2 %v1311_v59 }
 0x615   : > { %1334 = vrot.lane.b32.xlu0 %v2900_v16, %s2604_s27 }
 0x61d   : > { %1338 = vrot.lane.b32.xlu0 %v2910_v27, %s2604_s27 }
 0x621   : > { %v1131_v51 = vpop.xlane.xlu0 %1130 }
 0x622   : > { %v1141_v60 = vsub.f32 %v1125_v21, %v1131_v51 }
 0x624   : > { %v1145_v62 = vmul.f32 1.442695, %v1141_v60 }
 0x626   : > { %2455 = vpow2.f32 %v1145_v62 }
 0x62c   : > { %v2456_v39 = vpop.eup %2455 }
 0x62d   : > { %v1153_v3 = vsel %vm712_vm2, %v2456_v39, 0.0 }
 0x62e   : > { %1154 = vadd.xlane.f32.xlu2 %v1153_v3 }
 0x634   : > { %1136 = vmax.xlane.f32.xlu1 %v1135_v5  ;;  %v2370_v10 = vpop.permute.xlu0 %2369 }
 0x635   : > { %v2371_v17 = vunpack.i.l.bf16 %v2370_v10  ;;  %v2372_v18 = vunpack.i.h.bf16 %v2370_v10 }
 0x663   : > { %v1307_v15 = vpop.xlane.xlu0 %1306 }
 0x664   : > { %v1304_v8 = vpop.xlane.xlu1 %1303 }
 0x673   : > { %v1140_v6 = vpop.xlane.xlu2 %1139 }
 0x674   : > { %v1144_v7 = vsub.f32 %v1128_v50, %v1140_v6  ;;  %v1158_v29 = vpop.xlane.xlu0 %1157 }
 0x676   : > { %v1151_v9 = vmul.f32 1.442695, %v1144_v7 }
 0x678   : > { %2457 = vpow2.f32 %v1151_v9 }
 0x679   : > { %2459 = vrcp.f32 %v1304_v8 }
 0x67a   : > { %2461 = vrcp.f32 %v1307_v15 }
 0x67b   : > { %v1310_v20 = vpop.xlane.xlu2 %1309 }
 0x67c   : > { %v2365_v48 = vpop.permute.xlu1 %2364  ;;  %2463 = vrcp.f32 %v1310_v20 }
 0x67d   : > { %v2366_v12 = vunpack.i.l.bf16 %v2365_v48  ;;  %v2367_v14 = vunpack.i.h.bf16 %v2365_v48 }
 0x67e   : > { %v2458_v63 = vpop.eup %2457 }
 0x67f   : > { %v1162_v13 = vsel %vm712_vm2, %v2458_v63, 0.0  ;;  %1370 = vmatpush.msrb.mxu3 %v2366_v12  ;;  %v2460_v49 = vpop.eup %2459 }
 0x680   : > { %1163 = vadd.xlane.f32.xlu2 %v1162_v13  ;;  %v1318_v19 = vmul.f32 %v2460_v49, %v2977_v35  ;;  %v2462_v21 = vpop.eup %2461 }
 0x681   : > { %1371 = vmatpush.msrb.mxu3 %v2367_v14  ;;  %v1319_v22 = vmul.f32 %v2462_v21, %v2975_v30 }
 0x682   : > { %v2464_v23 = vpop.eup %2463 }
 0x683   : > { %1372 = vmatpush.msrb.mxu3 %v2371_v17  ;;  %v1313_v34 = vpop.xlane.xlu2 %1312  ;;  %v1320_v24 = vmul.f32 %v2464_v23, %v2452_v56  ;;  %v1438_v23 = vld [vmem:[%s3252_s6] sm:$0xff] }
 0x684   : > { %2465 = vrcp.f32 %v1313_v34  ;;  %1467 = vmatpush.msrb.mxu1 %v1438_v23 }
 0x685   : > { %1373 = vmatpush.msrb.mxu3 %v2372_v18 }
 0x686   : > { %2233 = vmatmul.msk.f32.vlgmr.msrb.gmra.mxu3 %vm712_vm2, %v1318_v19 }
 0x68a   : > { %v2466_v25 = vpop.eup %2465 }
 0x68b   : > { %v1321_v26 = vmul.f32 %v2466_v25, %v2454_v58 }
 0x68e   : > { %2234 = vmatmul.msk.f32.gmra.mxu3 %vm712_vm2, %v1319_v22 }
 0x696   : > { %2235 = vmatmul.msk.f32.gmra.mxu3 %vm712_vm2, %v1320_v24 }
 0x698   : > { %1336 = vrot.lane.b32.xlu2 %v2905_v61, %s2604_s27 }
 0x69e   : > { %2236 = vmatmul.msk.f32.gmra.mxu3 %vm712_vm2, %v1321_v26 }
 0x6a1   : > { %v1155_v28 = vpop.xlane.xlu2 %1154 }
 0x6a2   : > { %2467 = vrcp.f32 %v1155_v28 }
 0x6a3   : > { %2469 = vrcp.f32 %v1158_v29 }
 0x6a7   : > { %v1137_v30 = vpop.xlane.xlu1 %1136 }
 0x6a8   : > { %v2468_v35 = vpop.eup %2467  ;;  %v1143_v40 = vsub.f32 %v1127_v4, %v1137_v30 }
 0x6a9   : > { %v1169_v32 = vmul.f32 %v2468_v35, %v2456_v39  ;;  %v2470_v37 = vpop.eup %2469 }
 0x6aa   : > { %v1149_v36 = vmul.f32 1.442695, %v1143_v40  ;;  %v1170_v41 = vmul.f32 %v2470_v37, %v2985_v1  ;;  %v1335_v1 = vpop.permute.xlu0 %1334 }
 0x6ab   : > { %2225 = vmatmul.msk.f32.vlgmr.msrb.gmra.mxu0 %vm712_vm2, %v1169_v32 }
 0x6ac   : > { %2471 = vpow2.f32 %v1149_v36 }
 0x6b2   : > { %v2472_v42 = vpop.eup %2471  ;;  %v1339_v57 = vpop.permute.xlu0 %1338 }
 0x6b3   : > { %2226 = vmatmul.msk.f32.gmra.mxu0 %vm712_vm2, %v1170_v41  ;;  %v1159_v11 = vsel %vm712_vm2, %v2472_v42, 0.0 }
 0x6b4   : > { %1160 = vadd.xlane.f32.xlu1 %v1159_v11 }
 0x6cd   : > { %1387 = vrot.lane.b32.xlu1 %v3020_v43, %s2604_s27 }
 0x6d5   : > { %1340 = vrot.lane.b32.xlu1 %v2915_v31, %s2604_s27  ;;  %s2612_s27 = smov 1  }
 0x6f3   : > { %v1164_v46 = vpop.xlane.xlu2 %1163 }
 0x6fb   : > { %v1337_v33 = vpop.permute.xlu2 %1336 }
 0x709   : > { %v1375_v44 = vpop.f32.mrf.mxu3 }
 0x70a   : > { %v1376_v58 = vadd.f32 %v1375_v44, %v1335_v1 }
 0x711   : > { %v1378_v52 = vpop.f32.mrf.mxu3 }
 0x712   : > { %v1379_v59 = vadd.f32 %v1378_v52, %v1337_v33 }
 0x719   : > { %v1381_v56 = vpop.f32.mrf.mxu3 }
 0x71a   : > { %v1382_v51 = vadd.f32 %v1381_v56, %v1339_v57 }
 0x721   : > { %v1384_v7 = vpop.f32.mrf.mxu3 }
 0x727   : > { %v1161_v45 = vpop.xlane.xlu1 %1160 }
 0x728   : > { %2473 = vrcp.f32 %v1161_v45  ;;  %v1202_v24 = vpop.f32.mrf.mxu0 }
 0x729   : > { %2475 = vrcp.f32 %v1164_v46  ;;  %v1203_v25 = vadd.f32 %v1202_v24, %v2900_v16  ;;  %v2606_v46 = vmov 5  }
 0x72a   : > { %2373 = vset.pattern.permute.xlu1 %v2606_v46  ;;  %2376 = vset.pattern.permute.xlu2 %v2606_v46 }
 0x72b   : > { %v1217_v28 = vadd.f32 %v3020_v43, %v1203_v25 }
 0x72d   : > { %v1225_v29 = vmin.f32 %v1217_v28, 0.0  ;;  %vm1221_vm1 = vcmp.gt.f32.partialorder %v1217_v28, 0.0 }
 0x72e   : > { %v2474_v47 = vpop.eup %2473 }
 0x72f   : > { %v1171_v50 = vmul.f32 %v2474_v47, %v2472_v42  ;;  %v2476_v53 = vpop.eup %2475  ;;  %v1229_v40 = vmul.f32 1.442695, %v1225_v29 }
 0x730   : > { %v1172_v54 = vmul.f32 %v2476_v53, %v2458_v63  ;;  %v1205_v26 = vpop.f32.mrf.mxu0 }
 0x731   : > { %2227 = vmatmul.msk.f32.gmra.mxu0 %vm712_vm2, %v1171_v50  ;;  %v1206_v35 = vadd.f32 %v1205_v26, %v2905_v61  ;;  %v2607_v61 = vmov 4  }
 0x732   : > { %2374 = vset.pattern.permute.xlu0 %v2607_v61 }
 0x733   : > { %v1218_v32 = vadd.f32 %v3020_v43, %v1206_v35 }
 0x735   : > { %v1226_v36 = vmin.f32 %v1218_v32, 0.0  ;;  %vm1222_vm3 = vcmp.gt.f32.partialorder %v1218_v32, 0.0 }
 0x737   : > { %v1231_v41 = vmul.f32 1.442695, %v1226_v36 }
 0x739   : > { %2228 = vmatmul.msk.f32.gmra.mxu0 %vm712_vm2, %v1172_v54 }
 0x73f   : > { %v1388_v60 = vpop.permute.xlu1 %1387 }
 0x740   : > { %v1390_v62 = vadd.f32 %v1388_v60, %v1376_v58  ;;  %v1391_v0 = vadd.f32 %v1388_v60, %v1379_v59  ;;  %v1392_v38 = vadd.f32 %v1388_v60, %v1382_v51 }
 0x742   : > { %v1400_v39 = vmin.f32 %v1392_v38, 0.0  ;;  %v1399_v2 = vmin.f32 %v1391_v0, 0.0  ;;  %v1398_v3 = vmin.f32 %v1390_v62, 0.0  ;;  %vm1396_vm13 = vcmp.gt.f32.partialorder %v1392_v38, 0.0 }
 0x743   : > { %vm1395_vm14 = vcmp.gt.f32.partialorder %v1391_v0, 0.0  ;;  %vm1394_vm15 = vcmp.gt.f32.partialorder %v1390_v62, 0.0 }
 0x744   : > { %v1406_v4 = vmul.f32 1.442695, %v1400_v39  ;;  %v1404_v5 = vmul.f32 1.442695, %v1399_v2  ;;  %v1402_v6 = vmul.f32 1.442695, %v1398_v3 }
 0x746   : > { %2477 = vpow2.f32 %v1406_v4 }
 0x747   : > { %v1341_v8 = vpop.permute.xlu1 %1340  ;;  %2479 = vpow2.f32 %v1404_v5 }
 0x748   : > { %v1385_v9 = vadd.f32 %v1384_v7, %v1341_v8  ;;  %2481 = vpow2.f32 %v1402_v6 }
 0x74a   : > { %v1393_v10 = vadd.f32 %v1388_v60, %v1385_v9 }
 0x74c   : > { %v2478_v48 = vpop.eup %2477  ;;  %v1401_v63 = vmin.f32 %v1393_v10, 0.0  ;;  %vm1397_vm0 = vcmp.gt.f32.partialorder %v1393_v10, 0.0 }
 0x74d   : > { %v2480_v12 = vpop.eup %2479  ;;  %v2239_v13 = vadd.f32 -1.0, %v2478_v48 }
 0x74e   : > { %v2482_v14 = vpop.eup %2481  ;;  %v1408_v15 = vmul.f32 1.442695, %v1401_v63  ;;  %v2238_v49 = vadd.f32 -1.0, %v2480_v12 }
 0x74f   : > { %v1416_v17 = vsel %vm1396_vm13, %v1392_v38, %v2239_v13  ;;  %v2237_v18 = vadd.f32 -1.0, %v2482_v14 }
 0x750   : > { %1426 = vrot.lane.b32.xlu1 %v1416_v17, %s2605_s17  ;;  %v1415_v19 = vsel %vm1395_vm14, %v1391_v0, %v2238_v49  ;;  %2483 = vpow2.f32 %v1408_v15 }
 0x751   : > { %1424 = vrot.lane.b32.xlu2 %v1415_v19, %s2605_s17  ;;  %v1414_v20 = vsel %vm1394_vm15, %v1390_v62, %v2237_v18  ;;  %2485 = vpow2.f32 %v1229_v40 }
 0x752   : > { %1422 = vrot.lane.b32.xlu0 %v1414_v20, %s2605_s17  ;;  %2487 = vpow2.f32 %v1231_v41 }
 0x756   : > { %v2484_v21 = vpop.eup %2483 }
 0x757   : > { %v2240_v22 = vadd.f32 -1.0, %v2484_v21  ;;  %v2486_v44 = vpop.eup %2485 }
 0x758   : > { %v2229_v47 = vadd.f32 -1.0, %v2486_v44  ;;  %v2488_v53 = vpop.eup %2487 }
 0x759   : > { %v1417_v34 = vsel %vm1397_vm0, %v1393_v10, %v2240_v22  ;;  %vm2113_vm0 = vcmask 23552  }
 0x75a   : > { %1428 = vrot.lane.b32.xlu0 %v1417_v34, %s2605_s17  ;;  %v1241_v1 = vsel %vm1221_vm1, %v1217_v28, %v2229_v47  ;;  %s2608_s17 = smov 126   ;;  %vm2124_vm1 = vcmask 16384  }
 0x7ab   : > { %v1425_v56 = vpop.permute.xlu2 %1424 }
 0x7ae   : > { %v1208_v30 = vpop.f32.mrf.mxu0 }
 0x7af   : > { %v1209_v37 = vadd.f32 %v1208_v30, %v2910_v27  ;;  %v2533_v30 = vld [vmem:[%s3277_s28 + $0x8] sm:$0xff] }
 0x7b1   : > { %v1219_v42 = vadd.f32 %v3020_v43, %v1209_v37  ;;  %v2535_v37 = vld [vmem:[%s3277_s28 + $0x18] sm:$0xff] }
 0x7b3   : > { %v1227_v16 = vmin.f32 %v1219_v42, 0.0  ;;  %vm1223_vm4 = vcmp.gt.f32.partialorder %v1219_v42, 0.0 }
 0x7b5   : > { %v1233_v50 = vmul.f32 1.442695, %v1227_v16 }
 0x7b6   : > { %v1211_v11 = vpop.f32.mrf.mxu0 }
 0x7b7   : > { %v1212_v45 = vadd.f32 %v1211_v11, %v2915_v31  ;;  %2489 = vpow2.f32 %v1233_v50  ;;  %v2230_v31 = vadd.f32 -1.0, %v2488_v53 }
 0x7b9   : > { %v1220_v52 = vadd.f32 %v3020_v43, %v1212_v45  ;;  %v1242_v33 = vsel %vm1222_vm3, %v1218_v32, %v2230_v31  ;;  %v2534_v32 = vld [vmem:[%s3277_s28] sm:$0xff] }
 0x7ba   : > { %v1435_v59 = vsel %vm998_vm9, %v1242_v33, %v1425_v56 }
 0x7bb   : > { %v1228_v55 = vmin.f32 %v1220_v52, 0.0  ;;  %vm1224_vm5 = vcmp.gt.f32.partialorder %v1220_v52, 0.0 }
 0x7bd   : > { %v1235_v57 = vmul.f32 1.442695, %v1228_v55  ;;  %v2490_v58 = vpop.eup %2489 }
 0x7be   : > { %v2231_v43 = vadd.f32 -1.0, %v2490_v58 }
 0x7bf   : > { %2491 = vpow2.f32 %v1235_v57 }
 0x7c0   : > { %v1243_v60 = vsel %vm1223_vm4, %v1219_v42, %v2231_v43 }
 0x7c2   : > { %v1427_v51 = vpop.permute.xlu1 %1426 }
 0x7c3   : > { %v1436_v0 = vsel %vm998_vm9, %v1243_v60, %v1427_v51 }
 0x7c4   : > { %v1423_v27 = vpop.permute.xlu0 %1422 }
 0x7c5   : > { %v1434_v54 = vsel %vm998_vm9, %v1241_v1, %v1423_v27  ;;  %v2492_v62 = vpop.eup %2491 }
 0x7c6   : > { %2241 = vmatmul.msk.f32.vlgmr.msrb.gmra.mxu1 %vm1005_vm8, %v1434_v54  ;;  %v2232_v38 = vadd.f32 -1.0, %v2492_v62 }
 0x7c8   : > { %v1244_v2 = vsel %vm1224_vm5, %v1220_v52, %v2232_v38 }
 0x7cc   : > { %v1429_v39 = vpop.permute.xlu0 %1428 }
 0x7cd   : > { %v1437_v3 = vsel %vm998_vm9, %v1244_v2, %v1429_v39 }
 0x7ce   : > { %2242 = vmatmul.msk.f32.gmra.mxu1 %vm1005_vm8, %v1435_v59 }
 0x7d6   : > { %2243 = vmatmul.msk.f32.gmra.mxu1 %vm1005_vm8, %v1436_v0 }
 0x7de   : > { %2244 = vmatmul.msk.f32.gmra.mxu1 %vm1005_vm8, %v1437_v3 }
 0x843   : > { %v3054_v4 = vpop.f32.mrf.mxu1 }
 0x844   : > { %1531 = vperm.xlu0 %2374, %v3054_v4   ;;  %1668 = vperm.xlu1 %2373, %v3054_v4  }
 0x845   : > { %1485 = vrot.lane.b32.xlu2 %v3054_v4, %s2608_s17 }
 0x84b   : > { %v3059_v5 = vpop.f32.mrf.mxu1 }
 0x84c   : > { %2375 = vset.pattern.permute.xlu0 %v2606_v46  ;;  %1487 = vrot.lane.b32.xlu1 %v3059_v5, %s2608_s17 }
 0x84d   : > { %1672 = vperm.xlu0 %2375, %v3059_v5  }
 0x853   : > { %v3063_v6 = vpop.f32.mrf.mxu1 }
 0x854   : > { %1676 = vperm.xlu2 %2376, %v3063_v6  }
 0x855   : > { %1489 = vrot.lane.b32.xlu0 %v3063_v6, %s2608_s17 }
 0x856   : > { %2378 = vset.pattern.permute.xlu0 %v2607_v61 }
 0x85b   : > { %v3067_v7 = vpop.f32.mrf.mxu1 }
 0x85c   : > { %1491 = vrot.lane.b32.xlu2 %v3067_v7, %s2608_s17  ;;  %1643 = vmatpush.msra.mxu2 %v3067_v7  ;;  %v2381_v53 = vpack.i.bf16 %v3063_v6, %v3067_v7 }
 0x85d   : > { %1539 = vperm.xlu0 %2378, %v3063_v6   ;;  %2377 = vset.pattern.permute.xlu2 %v2607_v61 }
 0x85e   : > { %1644 = vmatpush.msra.mxu2 %v3063_v6 }
 0x860   : > { %1645 = vmatpush.msra.mxu2 %v3059_v5 }
 0x862   : > { %1646 = vmatpush.msra.mxu2 %v3054_v4 }
 0x864   : > { %1535 = vperm.xlu2 %2377, %v3059_v5  }
 0x86c   : > { %2379 = vset.pattern.permute.xlu2 %v2606_v46  ;;  %v2536_v46 = vld [vmem:[%s3277_s28 + $0x10] sm:$0xff] }
 0x86d   : > { %1680 = vperm.xlu2 %2379, %v3067_v7  }
 0x875   : > { %2380 = vset.pattern.permute.xlu2 %v2607_v61 }
 0x89f   : > { %v1486_v8 = vpop.permute.xlu2 %1485 }
 0x8a0   : > { %1497 = vxpose.xlu1.b32.start [1/4] (short) (narrow) %v1486_v8, 8 }
 0x8ae   : > { %v1677_v12 = vpop.permute.xlu2 %1676 }
 0x8b6   : > { %v1532_v9 = vpop.permute.xlu0 %1531  ;;  %v1669_v10 = vpop.permute.xlu1 %1668 }
 0x8b7   : > { %v1492_v14 = vpop.permute.xlu2 %1491 }
 0x8be   : > { %v1488_v48 = vpop.permute.xlu1 %1487 }
 0x8bf   : > { %v1673_v63 = vpop.permute.xlu0 %1672  ;;  %1498 = vxpose.xlu1.b32.cont [2/4] (short) (narrow) %v1488_v48, 8  ;;  %v1536_v15 = vpop.permute.xlu2 %1535 }
 0x8c7   : > { %v1490_v13 = vpop.permute.xlu0 %1489  ;;  %v1681_v18 = vpop.permute.xlu2 %1680 }
 0x8c8   : > { %1499 = vxpose.xlu1.b32.cont [3/4] (short) (narrow) %v1490_v13, 8 }
 0x8cf   : > { %v1540_v56 = vpop.permute.xlu0 %1539 }
 0x8d0   : > { %1500 = vxpose.xlu1.b32.end [4/4] (short) (narrow) %v1492_v14, 8 }
 0x95c   : > { %v1513_v49 = vpop.trf.xlu1 }
 0x95d   : > { %v1683_v17 = vperm.slane %v1513_v49, 1  ;;  %v1546_v25 = vperm.slane %v1513_v49, 0 }
 0x95f   : > { %v1685_v19 = vadd.f32 %v1683_v17, %v1673_v63  ;;  %v1684_v20 = vadd.f32 %v1683_v17, %v1669_v10  ;;  %v1687_v21 = vadd.f32 %v1683_v17, %v1681_v18  ;;  %v1686_v22 = vadd.f32 %v1683_v17, %v1677_v12 }
 0x960   : > { %v1547_v42 = vadd.f32 %v1546_v25, %v1532_v9  ;;  %v1548_v54 = vadd.f32 %v1546_v25, %v1536_v15  ;;  %v1549_v33 = vadd.f32 %v1546_v25, %v1540_v56 }
 0x961   : > { %v1689_v34 = vmul.f32 0.2, %v1685_v19  ;;  %v1688_v23 = vmul.f32 0.2, %v1684_v20  ;;  %v1691_v24 = vmul.f32 0.2, %v1687_v21 }
 0x962   : > { %v1690_v35 = vmul.f32 0.2, %v1686_v22  ;;  %v1551_v47 = vmul.f32 0.2, %v1547_v42  ;;  %v1552_v55 = vmul.f32 0.2, %v1548_v54 }
 0x963   : > { %v1693_v26 = vmax.f32 %v1685_v19, %v1689_v34  ;;  %v1692_v28 = vmax.f32 %v1684_v20, %v1688_v23  ;;  %v1695_v29 = vmax.f32 %v1687_v21, %v1691_v24  ;;  %v1553_v59 = vmul.f32 0.2, %v1549_v33 }
 0x964   : > { %v1694_v45 = vmax.f32 %v1686_v22, %v1690_v35  ;;  %v1555_v52 = vmax.f32 %v1547_v42, %v1551_v47  ;;  %v1556_v31 = vmax.f32 %v1548_v54, %v1552_v55  ;;  %v2386_v24 = vpack.i.bf16 %v3054_v4, %v3059_v5 }
 0x965   : > { %v1697_v40 = vadd.f32 %v2533_v30, %v1693_v26  ;;  %v1696_v36 = vadd.f32 %v2534_v32, %v1692_v28  ;;  %v1699_v41 = vadd.f32 %v2535_v37, %v1695_v29  ;;  %v1557_v43 = vmax.f32 %v1549_v33, %v1553_v59 }
 0x966   : > { %v3092_v61 = vadd.f32 %v2536_v46, %v1694_v45  ;;  %v1559_v27 = vadd.f32 %v2534_v32, %v1555_v52  ;;  %v1560_v57 = vadd.f32 %v2533_v30, %v1556_v31  ;;  %v3127_v52 = vld [vmem:[%s3253_s7] ss:$0 sm:$0xff] }
 0x967   : > { %v1703_v11 = vsel %vm712_vm2, %v1697_v40, -inf  ;;  %v1700_v44 = vsel %vm712_vm2, %v1696_v36, -inf  ;;  %v1709_v16 = vsel %vm712_vm2, %v1699_v41, -inf  ;;  %v1561_v51 = vadd.f32 %v2536_v46, %v1557_v43 }
 0x968   : > { %1704 = vmax.xlane.f32.xlu0 %v1703_v11  ;;  %1701 = vmax.xlane.f32.xlu2 %v1700_v44  ;;  %v1706_v50 = vsel %vm712_vm2, %v3092_v61, -inf  ;;  %v1563_v1 = vsel %vm712_vm2, %v1559_v27, -inf  ;;  %v1566_v58 = vsel %vm712_vm2, %v1560_v57, -inf }
 0x969   : > { %1710 = vmax.xlane.f32.xlu1 %v1709_v16  ;;  %v1569_v60 = vsel %vm712_vm2, %v1561_v51, -inf }
 0x970   : > { %1707 = vmax.xlane.f32.xlu0 %v1706_v50 }
 0x978   : > { %1564 = vmax.xlane.f32.xlu0 %v1563_v1 }
 0x980   : > { %1543 = vperm.xlu2 %2380, %v3067_v7  }
 0x98c   : > { %2382 = vrot.lane.b32.xlu0 %v2381_v53, %s2609_s29 }
 0x9a9   : > { %1567 = vmax.xlane.f32.xlu2 %v1566_v58 }
 0x9b6   : > { %1570 = vmax.xlane.f32.xlu0 %v1569_v60 }
 0x9db   : > { %v1702_v62 = vpop.xlane.xlu2 %1701  ;;  %v1705_v0 = vpop.xlane.xlu0 %1704 }
 0x9dc   : > { %v1712_v38 = vsub.f32 %v1696_v36, %v1702_v62  ;;  %v1713_v2 = vsub.f32 %v1697_v40, %v1705_v0  ;;  %v1711_v12 = vpop.xlane.xlu1 %1710 }
 0x9dd   : > { %v1715_v49 = vsub.f32 %v1699_v41, %v1711_v12 }
 0x9de   : > { %v1716_v39 = vmul.f32 1.442695, %v1712_v38  ;;  %v1718_v48 = vmul.f32 1.442695, %v1713_v2 }
 0x9df   : > { %v1722_v18 = vmul.f32 1.442695, %v1715_v49 }
 0x9e0   : > { %2493 = vpow2.f32 %v1716_v39 }
 0x9e1   : > { %2495 = vpow2.f32 %v1718_v48 }
 0x9e2   : > { %2497 = vpow2.f32 %v1722_v18 }
 0x9e3   : > { %v1544_v3 = vpop.permute.xlu2 %1543  ;;  %v1708_v9 = vpop.xlane.xlu0 %1707 }
 0x9e4   : > { %v1550_v8 = vadd.f32 %v1546_v25, %v1544_v3  ;;  %v1714_v40 = vsub.f32 %v3092_v61, %v1708_v9 }
 0x9e6   : > { %v1554_v10 = vmul.f32 0.2, %v1550_v8  ;;  %v3103_v63 = vpop.eup %2493  ;;  %v1720_v32 = vmul.f32 1.442695, %v1714_v40 }
 0x9e7   : > { %v1724_v14 = vsel %vm712_vm2, %v3103_v63, 0.0  ;;  %v3108_v20 = vpop.eup %2495 }
 0x9e8   : > { %v1558_v13 = vmax.f32 %v1550_v8, %v1554_v10  ;;  %1725 = vadd.xlane.f32.xlu0 %v1724_v14  ;;  %v1727_v22 = vsel %vm712_vm2, %v3108_v20, 0.0  ;;  %v3112_v23 = vpop.eup %2497 }
 0x9e9   : > { %v1733_v25 = vsel %vm712_vm2, %v3112_v23, 0.0 }
 0x9ea   : > { %v1562_v15 = vadd.f32 %v2535_v37, %v1558_v13 }
 0x9eb   : > { %v1565_v19 = vpop.xlane.xlu0 %1564 }
 0x9ec   : > { %v1572_v17 = vsel %vm712_vm2, %v1562_v15, -inf  ;;  %v1575_v21 = vsub.f32 %v1559_v27, %v1565_v19 }
 0x9ed   : > { %1573 = vmax.xlane.f32.xlu2 %v1572_v17 }
 0x9ee   : > { %v1579_v34 = vmul.f32 1.442695, %v1575_v21 }
 0x9f0   : > { %2499 = vpow2.f32 %v1579_v34 }
 0x9f1   : > { %2501 = vpow2.f32 %v1720_v32  ;;  %v2253_v32 = vld [vmem:[%s3254_s8 + $0x2] sm:$0x3] }
 0x9f5   : > { %1728 = vadd.xlane.f32.xlu2 %v1727_v22 }
 0x9f6   : > { %v2500_v29 = vpop.eup %2499 }
 0x9f7   : > { %v1587_v30 = vsel %vm712_vm2, %v2500_v29, 0.0  ;;  %v2502_v42 = vpop.eup %2501 }
 0x9f8   : > { %v1730_v44 = vsel %vm712_vm2, %v2502_v42, 0.0 }
 0x9fc   : > { %2387 = vrot.lane.b32.xlu0 %v2386_v24, %s2609_s29 }
 0x9fd   : > { %1734 = vadd.xlane.f32.xlu2 %v1733_v25 }
 0x9fe   : > { %v2383_v26 = vpop.permute.xlu0 %2382 }
 0x9ff   : > { %v2384_v28 = vunpack.i.l.bf16 %v2383_v26  ;;  %v2385_v35 = vunpack.i.h.bf16 %v2383_v26 }
 0xa01   : > { %1792 = vmatpush.msra.mxu0 %v2384_v28 }
 0xa03   : > { %1793 = vmatpush.msra.mxu0 %v2385_v35 }
 0xa05   : > { %1588 = vadd.xlane.f32.xlu2 %v1587_v30 }
 0xa1c   : > { %v1568_v36 = vpop.xlane.xlu2 %1567 }
 0xa1d   : > { %v1576_v37 = vsub.f32 %v1560_v57, %v1568_v36  ;;  %v1837_v36 = vld [vmem:[%s3254_s8] sm:$0x3] }
 0xa1f   : > { %v1581_v41 = vmul.f32 1.442695, %v1576_v37  ;;  %v2258_v37 = vld [vmem:[%s3254_s8 + $0x4] sm:$0x3] }
 0xa21   : > { %2503 = vpow2.f32 %v1581_v41 }
 0xa26   : > { %1731 = vadd.xlane.f32.xlu0 %v1730_v44 }
 0xa27   : > { %v2504_v11 = vpop.eup %2503 }
 0xa28   : > { %v1590_v16 = vsel %vm712_vm2, %v2504_v11, 0.0 }
 0xa29   : > { %v1571_v45 = vpop.xlane.xlu0 %1570  ;;  %1591 = vadd.xlane.f32.xlu2 %v1590_v16 }
 0xa2a   : > { %v1577_v46 = vsub.f32 %v1561_v51, %v1571_v45 }
 0xa2c   : > { %v1583_v47 = vmul.f32 1.442695, %v1577_v46 }
 0xa2e   : > { %2505 = vpow2.f32 %v1583_v47 }
 0xa34   : > { %v2506_v50 = vpop.eup %2505 }
 0xa35   : > { %v1593_v61 = vsel %vm712_vm2, %v2506_v50, 0.0 }
 0xa36   : > { %1594 = vadd.xlane.f32.xlu2 %v1593_v61 }
 0xa3a   : > { %1809 = vrot.lane.b32.xlu0 %v3127_v52, %s2609_s29 }
 0xa42   : > { %1762 = vrot.lane.b32.xlu0 %v3067_v7, %s2610_s22 }
 0xa4a   : > { %1609 = vrot.lane.b32.xlu0 %v3059_v5, %s2611_s2 }
 0xa4e   : > { %1758 = vrot.lane.b32.xlu2 %v3059_v5, %s2610_s22 }
 0xa52   : > { %1613 = vrot.lane.b32.xlu0 %v3067_v7, %s2611_s2 }
 0xa56   : > { %1756 = vrot.lane.b32.xlu2 %v3054_v4, %s2610_s22 }
 0xa5b   : > { %v1726_v54 = vpop.xlane.xlu0 %1725 }
 0xa60   : > { %v1574_v27 = vpop.xlane.xlu2 %1573 }
 0xa61   : > { %v1578_v1 = vsub.f32 %v1562_v15, %v1574_v27 }
 0xa63   : > { %v1585_v53 = vmul.f32 1.442695, %v1578_v1  ;;  %v2261_v1 = vld [vmem:[%s3254_s8 + $0x6] sm:$0x3] }
 0xa65   : > { %2507 = vpow2.f32 %v1585_v53 }
 0xa66   : > { %2509 = vrcp.f32 %v1726_v54 }
 0xa68   : > { %v1729_v55 = vpop.xlane.xlu2 %1728 }
 0xa69   : > { %2511 = vrcp.f32 %v1729_v55 }
 0xa6b   : > { %v2508_v31 = vpop.eup %2507 }
 0xa6c   : > { %v1596_v56 = vsel %vm712_vm2, %v2508_v31, 0.0  ;;  %v2510_v5 = vpop.eup %2509 }
 0xa6d   : > { %1597 = vadd.xlane.f32.xlu1 %v1596_v56  ;;  %v1740_v59 = vmul.f32 %v2510_v5, %v3103_v63 }
 0xa6e   : > { %v2388_v57 = vpop.permute.xlu0 %2387 }
 0xa6f   : > { %v2389_v58 = vunpack.i.l.bf16 %v2388_v57  ;;  %v2390_v7 = vunpack.i.h.bf16 %v2388_v57  ;;  %v2512_v51 = vpop.eup %2511 }
 0xa70   : > { %v1735_v33 = vpop.xlane.xlu2 %1734  ;;  %v1741_v60 = vmul.f32 %v2512_v51, %v3108_v20 }
 0xa71   : > { %1794 = vmatpush.msra.mxu0 %v2389_v58 }
 0xa73   : > { %1795 = vmatpush.msra.mxu0 %v2390_v7 }
 0xa74   : > { %2249 = vmatmul.msk.f32.vlgmr.msra.gmra.mxu0 %vm712_vm2, %v1740_v59 }
 0xa78   : > { %v1589_v43 = vpop.xlane.xlu2 %1588 }
 0xa79   : > { %2513 = vrcp.f32 %v1589_v43 }
 0xa7c   : > { %2250 = vmatmul.msk.f32.gmra.mxu0 %vm712_vm2, %v1741_v60 }
 0xa7f   : > { %v2514_v62 = vpop.eup %2513 }
 0xa80   : > { %v1603_v0 = vmul.f32 %v2514_v62, %v2500_v29 }
 0xa82   : > { %2245 = vmatmul.msk.f32.vlgmr.msra.gmra.mxu2 %vm712_vm2, %v1603_v0 }
 0xa86   : > { %1760 = vrot.lane.b32.xlu1 %v3063_v6, %s2610_s22 }
 0xa8e   : > { %1611 = vrot.lane.b32.xlu1 %v3063_v6, %s2611_s2 }
 0xa99   : > { %v1732_v38 = vpop.xlane.xlu0 %1731 }
 0xa9a   : > { %2515 = vrcp.f32 %v1732_v38 }
 0xa9c   : > { %v1592_v39 = vpop.xlane.xlu2 %1591 }
 0xa9d   : > { %2517 = vrcp.f32 %v1592_v39  ;;  %v2396_v39 = vld [vmem:[%s3255_s9] ss:$0 sm:$0xff] }
 0xa9e   : > { %2519 = vrcp.f32 %v1735_v33 }
 0xaa0   : > { %v2516_v2 = vpop.eup %2515 }
 0xaa1   : > { %v1742_v8 = vmul.f32 %v2516_v2, %v2502_v42 }
 0xaa3   : > { %v2518_v3 = vpop.eup %2517  ;;  %2251 = vmatmul.msk.f32.gmra.mxu0 %vm712_vm2, %v1742_v8 }
 0xaa4   : > { %v1604_v9 = vmul.f32 %v2518_v3, %v2504_v11  ;;  %v2520_v10 = vpop.eup %2519 }
 0xaa5   : > { %v1743_v63 = vmul.f32 %v2520_v10, %v3112_v23 }
 0xaa6   : > { %2246 = vmatmul.msk.f32.gmra.mxu2 %vm712_vm2, %v1604_v9 }
 0xaa9   : > { %v1595_v48 = vpop.xlane.xlu2 %1594 }
 0xaaa   : > { %2521 = vrcp.f32 %v1595_v48 }
 0xaab   : > { %2252 = vmatmul.msk.f32.gmra.mxu0 %vm712_vm2, %v1743_v63 }
 0xaac   : > { %v1810_v20 = vpop.permute.xlu0 %1809 }
 0xab0   : > { %v2522_v6 = vpop.eup %2521 }
 0xab1   : > { %v1605_v12 = vmul.f32 %v2522_v6, %v2506_v50  ;;  %v1759_v17 = vpop.permute.xlu2 %1758 }
 0xab3   : > { %2247 = vmatmul.msk.f32.gmra.mxu2 %vm712_vm2, %v1605_v12 }
 0xab4   : > { %v1763_v29 = vpop.permute.xlu0 %1762 }
 0xab9   : > { %v1757_v22 = vpop.permute.xlu2 %1756 }
 0xabc   : > { %v1610_v42 = vpop.permute.xlu0 %1609 }
 0xae0   : > { %v1598_v13 = vpop.xlane.xlu1 %1597 }
 0xae1   : > { %2523 = vrcp.f32 %v1598_v13 }
 0xae7   : > { %v2524_v14 = vpop.eup %2523 }
 0xae8   : > { %v1606_v15 = vmul.f32 %v2524_v14, %v2508_v31  ;;  %v1614_v31 = vpop.permute.xlu0 %1613 }
 0xaea   : > { %2248 = vmatmul.msk.f32.gmra.mxu2 %vm712_vm2, %v1606_v15  ;;  %vm1844_vm2 = vcmask 1041408  }
 0xaeb   : > { %2254 = vmatpush.msk.msra.mxu3 %vm1844_vm2, %v2253_v32  ;;  %2256 = vmatpush.msk.msra.mxu1 %vm1844_vm2, %v1837_v36 }
 0xaec   : > { %2259 = vmatpush.msk.msrb.mxu2 %vm1844_vm2, %v2258_v37 }
 0xaed   : > { %2262 = vmatpush.msk.msrb.mxu3 %vm1844_vm2, %v2261_v1 }
 0xaf1   : > { %v1797_v49 = vpop.f32.mrf.mxu0 }
 0xaf2   : > { %v1798_v34 = vadd.f32 %v1797_v49, %v1757_v22 }
 0xaf4   : > { %v1812_v23 = vadd.f32 %v1810_v20, %v1798_v34 }
 0xaf8   : > { %v1761_v24 = vpop.permute.xlu1 %1760 }
 0xaf9   : > { %v1800_v18 = vpop.f32.mrf.mxu0 }
 0xafa   : > { %v1801_v19 = vadd.f32 %v1800_v18, %v1759_v17 }
 0xafc   : > { %v1813_v21 = vadd.f32 %v1810_v20, %v1801_v19 }
 0xafe   : > { %1822 = vrot.lane.b32.xlu2 %v1813_v21, %s2612_s27 }
 0xb00   : > { %v1612_v53 = vpop.permute.xlu1 %1611 }
 0xb06   : > { %1607 = vrot.lane.b32.xlu2 %v3054_v4, %s2611_s2  ;;  %v1648_v4 = vpop.f32.mrf.mxu2 }
 0xb0e   : > { %1820 = vrot.lane.b32.xlu2 %v1812_v23, %s2612_s27 }
 0xb20   : > { %v1803_v25 = vpop.f32.mrf.mxu0 }
 0xb21   : > { %v1804_v26 = vadd.f32 %v1803_v25, %v1761_v24 }
 0xb23   : > { %v1814_v28 = vadd.f32 %v1810_v20, %v1804_v26 }
 0xb25   : > { %1824 = vrot.lane.b32.xlu1 %v1814_v28, %s2612_s27 }
 0xb28   : > { %v1806_v35 = vpop.f32.mrf.mxu0 }
 0xb29   : > { %v1807_v30 = vadd.f32 %v1806_v35, %v1763_v29  ;;  %v1651_v41 = vpop.f32.mrf.mxu2 }
 0xb2a   : > { %v1652_v11 = vadd.f32 %v1651_v41, %v1610_v42 }
 0xb2b   : > { %v1815_v40 = vadd.f32 %v1810_v20, %v1807_v30 }
 0xb2c   : > { %v1664_v44 = vadd.f32 %v3127_v52, %v1652_v11 }
 0xb2d   : > { %1826 = vrot.lane.b32.xlu0 %v1815_v40, %s2612_s27 }
 0xb36   : > { %v1654_v54 = vpop.f32.mrf.mxu2 }
 0xb37   : > { %v1655_v55 = vadd.f32 %v1654_v54, %v1612_v53 }
 0xb39   : > { %v1665_v56 = vadd.f32 %v3127_v52, %v1655_v55  ;;  %v2614_v55 = vmov 8.0  }
 0xb58   : > { %v1823_v16 = vpop.permute.xlu2 %1822 }
 0xb59   : > { %v1834_v45 = vsel %vm1832_vm6, %v1664_v44, %v1823_v16  ;;  %v2017_v44 = vld [vmem:[%s3258_s12] sm:$0x3] }
 0xb5a   : > { %2255 = vmatmul.msk.f32.vlgmr.msra.gmra.mxu3 %vm1840_vm7, %v1834_v45  ;;  %2264 = vmatpush.msk.msrb.mxu1 %vm1844_vm2, %v2017_v44  ;;  %v2013_v45 = vld [vmem:[%s3256_s10] sm:$0xff] }
 0xb60   : > { %v1608_v46 = vpop.permute.xlu2 %1607 }
 0xb61   : > { %v1649_v47 = vadd.f32 %v1648_v4, %v1608_v46 }
 0xb63   : > { %v1663_v50 = vadd.f32 %v3127_v52, %v1649_v47  ;;  %v2015_v47 = vld [vmem:[%s3257_s11] sm:$0xff] }
 0xb68   : > { %v1821_v61 = vpop.permute.xlu2 %1820 }
 0xb69   : > { %v1833_v27 = vsel %vm1832_vm6, %v1663_v50, %v1821_v61 }
 0xb6a   : > { %2257 = vmatmul.msk.f32.vlgmr.msra.gmra.mxu1 %vm1840_vm7, %v1833_v27 }
 0xb6d   : > { %v1657_v57 = vpop.f32.mrf.mxu2 }
 0xb6e   : > { %v1658_v58 = vadd.f32 %v1657_v57, %v1614_v31 }
 0xb70   : > { %v1666_v7 = vadd.f32 %v3127_v52, %v1658_v58  ;;  %v2613_v52 = vmov 16.0  }
 0xb71   : > { %2525 = vrcp.f32 %v2613_v52 }
 0xb77   : > { %v2526_v10 = vpop.eup %2525 }
 0xb78   : > { %v1968_v48 = vmul.f32 16.0, %v2526_v10  ;;  %vm1972_vm8 = vweird.f32 %v2526_v10 }
 0xb7a   : > { %v1969_v63 = vsub.f32 1.0, %v1968_v48 }
 0xb7c   : > { %v1970_v14 = vmul.f32 %v2526_v10, %v1969_v63 }
 0xb7e   : > { %v1971_v17 = vadd.f32 %v2526_v10, %v1970_v14 }
 0xb80   : > { %v1973_v20 = vsel %vm1972_vm8, %v2526_v10, %v1971_v17 }
 0xb97   : > { %v1825_v33 = vpop.permute.xlu1 %1824 }
 0xb98   : > { %v1835_v5 = vsel %vm1832_vm6, %v1665_v56, %v1825_v33 }
 0xb99   : > { %2260 = vmatmul.msk.f32.vlgmr.msrb.gmra.mxu2 %vm1840_vm7, %v1835_v5 }
 0xb9f   : > { %v1827_v59 = vpop.permute.xlu0 %1826 }
 0xba0   : > { %v1836_v43 = vsel %vm1832_vm6, %v1666_v7, %v1827_v59 }
 0xba1   : > { %2263 = vmatmul.msk.f32.vlgmr.msrb.gmra.mxu3 %vm1840_vm7, %v1836_v43 }
 0xbdd   : > { %v1865_v51 = vpop.f32.mrf.mxu3 }
 0xbe7   : > { %v1891_v60 = vpop.f32.mrf.mxu1 }
 0xbe8   : > { %v1892_v0 = vadd.f32 %v1891_v60, %v1865_v51 }
 0xc1c   : > { %v1919_v62 = vpop.f32.mrf.mxu2 }
 0xc1d   : > { %v1922_v38 = vadd.f32 %v1919_v62, %v1892_v0 }
 0xc24   : > { %v1948_v2 = vpop.f32.mrf.mxu3 }
 0xc25   : > { %v1951_v3 = vadd.f32 %v1948_v2, %v1922_v38 }
 0xc27   : > { %v1956_v8 = vadd.f32 %v2396_v39, %v1951_v3 }
 0xc29   : > { %v1957_v9 = vsel %vm1840_vm7, %v1956_v8, 0.0 }
 0xc2a   : > { %1958 = vadd.xlane.f32.xlu1 %v1957_v9 }
 0xc9d   : > { %v1959_v6 = vpop.xlane.xlu1 %1958 }
 0xc9e   : > { %v1960_v12 = vrot.slane %v1959_v6, 4 }
 0xca0   : > { %v1961_v13 = vadd.f32 %v1960_v12, %v1959_v6 }
 0xca2   : > { %v1962_v15 = vrot.slane %v1961_v13, 2 }
 0xca4   : > { %v1963_v49 = vadd.f32 %v1962_v15, %v1961_v13 }
 0xca6   : > { %v1964_v18 = vrot.slane %v1963_v49, 1 }
 0xca8   : > { %v1965_v19 = vadd.f32 %v1964_v18, %v1963_v49 }
 0xcaa   : > { %2270 = vpush %v1965_v19 }
 0xcab   : > { %2272 = vpush %v1973_v20  ;;  %v2615_v20 = vmov 0  }
 0xcac   : > { %2391 = vset.pattern.permute.xlu2 %v2615_v20  ;;  %2392 = vset.pattern.permute.xlu0 %v2615_v20 }
 0xcdb   : > { %s2271_s29 = spop %2270 }
 0xcdc   : > { %s2273_s26 = spop %2272 }
 0xcdd   : > { %s1975_s30 = smul.f32 %s2273_s26, %s2271_s29 }
 0xcdf   : > { %v1976_v21 = vstv %s1975_s30 }
 0xce0   : > { %v1977_v22 = vsub.f32 %v1956_v8, %v1976_v21 }
 0xce2   : > { %v1978_v34 = vmul.f32 %v1977_v22, %v1977_v22 }
 0xce4   : > { %v1979_v23 = vsel %vm1840_vm7, %v1978_v34, 0.0 }
 0xce5   : > { %1980 = vadd.xlane.f32.xlu0 %v1979_v23  ;;  %v2104_v23 = vld [vmem:[%s3260_s14] sm:$0xff] }
 0xd58   : > { %v1981_v24 = vpop.xlane.xlu0 %1980 }
 0xd59   : > { %v1982_v25 = vrot.slane %v1981_v24, 4 }
 0xd5b   : > { %v1983_v26 = vadd.f32 %v1982_v25, %v1981_v24 }
 0xd5d   : > { %v1984_v28 = vrot.slane %v1983_v26, 2 }
 0xd5f   : > { %v1985_v29 = vadd.f32 %v1984_v28, %v1983_v26  ;;  %v2106_v26 = vld [vmem:[%s3261_s15] sm:$0xff] }
 0xd61   : > { %v1986_v35 = vrot.slane %v1985_v29, 1 }
 0xd63   : > { %v1987_v30 = vadd.f32 %v1986_v35, %v1985_v29 }
 0xd65   : > { %2274 = vpush %v1987_v30 }
 0xd96   : > { %s2275_s22 = spop %2274 }
 0xd97   : > { %s1997_s2 = smul.f32 %s2275_s22, %s2273_s26 }
 0xd99   : > { %s1998_s27 = sadd.f32 1e-05, %s1997_s2 }
 0xd9b   : > { %v1999_v40 = vstv %s1998_s27  ;;  %s2018_s27 = sld [smem:[#allocation2]] }
 0xd9c   : > { %2527 = vrsqrt.f32 %v1999_v40  ;;  %vm2006_vm10 = vweird.f32 %v1999_v40 }
 0xd9d   : > { %2529 = vrcp.f32 %v2614_v55 }
 0xda1   : > { %v2019_v27 = vstv %s2018_s27 }
 0xda2   : > { %v2528_v32 = vpop.eup %2527 }
 0xda3   : > { %v2001_v4 = vmul.f32 %v2528_v32, %v1999_v40  ;;  %vm2007_vm9 = vweird.f32 %v2528_v32  ;;  %v2530_v31 = vpop.eup %2529 }
 0xda4   : > { %vm2008_vm11 = vmor %vm2006_vm10, %vm2007_vm9  ;;  %v2057_v56 = vmul.f32 8.0, %v2530_v31  ;;  %vm2061_vm12 = vweird.f32 %v2530_v31 }
 0xda5   : > { %v2002_v36 = vmul.f32 %v2528_v32, %v2001_v4 }
 0xda6   : > { %v2058_v57 = vsub.f32 1.0, %v2057_v56 }
 0xda7   : > { %v2003_v37 = vmul.f32 0.5, %v2002_v36 }
 0xda8   : > { %v2059_v7 = vmul.f32 %v2530_v31, %v2058_v57 }
 0xda9   : > { %v2004_v41 = vsub.f32 1.5, %v2003_v37 }
 0xdaa   : > { %v2060_v51 = vadd.f32 %v2530_v31, %v2059_v7 }
 0xdab   : > { %v2005_v42 = vmul.f32 %v2528_v32, %v2004_v41 }
 0xdac   : > { %v2062_v0 = vsel %vm2061_vm12, %v2530_v31, %v2060_v51 }
 0xdad   : > { %v2009_v11 = vsel %vm2008_vm11, %v2528_v32, %v2005_v42 }
 0xdae   : > { %2276 = vpush %v2009_v11 }
 0xddf   : > { %s2277_s29 = spop %2276 }
 0xde0   : > { %v2011_v16 = vstv %s2277_s29 }
 0xde1   : > { %v2012_v46 = vmul.f32 %v2011_v16, %v1977_v22  ;;  %v2102_v22 = vld [vmem:[%s3259_s13] sm:$0xff] }
 0xde3   : > { %v2014_v50 = vmul.f32 %v2013_v45, %v2012_v46 }
 0xde5   : > { %v2016_v61 = vadd.f32 %v2015_v47, %v2014_v50 }
 0xde7   : > { %2265 = vmatmul.msk.f32.vlgmr.msrb.gmra.mxu1 %vm1840_vm7, %v2016_v61 }
 0xe64   : > { %v2043_v1 = vpop.f32.mrf.mxu1 }
 0xe65   : > { %v2044_v53 = vadd.f32 %v2043_v1, %v2019_v27 }
 0xe67   : > { %v2046_v54 = vsel %vm1832_vm6, %v2044_v53, 0.0 }
 0xe68   : > { %2047 = vadd.xlane.f32.xlu2 %v2046_v54 }
 0xedb   : > { %v2048_v33 = vpop.xlane.xlu2 %2047 }
 0xedc   : > { %v2049_v5 = vrot.slane %v2048_v33, 4 }
 0xede   : > { %v2050_v58 = vadd.f32 %v2049_v5, %v2048_v33 }
 0xee0   : > { %v2051_v59 = vrot.slane %v2050_v58, 2 }
 0xee2   : > { %v2052_v43 = vadd.f32 %v2051_v59, %v2050_v58 }
 0xee4   : > { %v2053_v60 = vrot.slane %v2052_v43, 1 }
 0xee6   : > { %v2054_v62 = vadd.f32 %v2053_v60, %v2052_v43 }
 0xee8   : > { %2278 = vpush %v2054_v62 }
 0xee9   : > { %2280 = vpush %v2062_v0 }
 0xf19   : > { %s2279_s23 = spop %2278 }
 0xf1a   : > { %s2281_s17 = spop %2280 }
 0xf1b   : > { %s2064_s29 = smul.f32 %s2281_s17, %s2279_s23 }
 0xf1d   : > { %v2065_v38 = vstv %s2064_s29 }
 0xf1e   : > { %v2066_v39 = vsub.f32 %v2044_v53, %v2065_v38 }
 0xf20   : > { %v2067_v2 = vmul.f32 %v2066_v39, %v2066_v39 }
 0xf22   : > { %v2068_v3 = vsel %vm1832_vm6, %v2067_v2, 0.0 }
 0xf23   : > { %2069 = vadd.xlane.f32.xlu1 %v2068_v3 }
 0xf96   : > { %v2070_v8 = vpop.xlane.xlu1 %2069 }
 0xf97   : > { %v2071_v9 = vrot.slane %v2070_v8, 4 }
 0xf99   : > { %v2072_v52 = vadd.f32 %v2071_v9, %v2070_v8 }
 0xf9b   : > { %v2073_v10 = vrot.slane %v2072_v52, 2 }
 0xf9d   : > { %v2074_v48 = vadd.f32 %v2073_v10, %v2072_v52 }
 0xf9f   : > { %v2075_v63 = vrot.slane %v2074_v48, 1 }
 0xfa1   : > { %v2076_v6 = vadd.f32 %v2075_v63, %v2074_v48 }
 0xfa3   : > { %2282 = vpush %v2076_v6 }
 0xfd4   : > { %s2283_s26 = spop %2282 }
 0xfd5   : > { %s2086_s30 = smul.f32 %s2283_s26, %s2281_s17  ;;  %s2135_s17 = scalar_lea.hbm %s3264_s18, %s2738_s16 }
 0xfd7   : > { %s2087_s22 = sadd.f32 1e-05, %s2086_s30  ;;  %s2139_s30 = sshll.u32 %s2135_s17, 4  ;;  %s2140_s30 = int_to_ptr.hbm [resolvable:$true] %s2139_s30 }
 0xfd8   : > { %s2551_s4 = sshra.s32 %s2140_s30, 4  ;;  %s2552_s4 = int_to_ptr.hbm [resolvable:$true] %s2551_s4 }
 0xfd9   : > { %v2088_v12 = vstv %s2087_s22  ;;  %s2121_s22 = sld [smem:[#allocation3]]  ;;  %s2553_s5 = scalar_lea.hbm %s2552_s4, 1 }
 0xfda   : > { %2531 = vrsqrt.f32 %v2088_v12  ;;  %vm2095_vm14 = vweird.f32 %v2088_v12  ;;  %p2554_p11 = scmp.ne.s32.totalorder %s2552_s4, %s2553_s5  ;;  %p2558_p0 = scmp.lt.s32.totalorder %s2552_s4, %s3264_s18 }
 0xfdc   : > { %p2555_p12 = pnand %p2554_p11, %p2755_p5 }
 0xfde   : > { %p2556_p13 = pneg %p2555_p12 }
 0xfdf   : > { %v2122_v37 = vstv %s2121_s22  ;;  %s2557_s22 = scalar_lea.hbm %s3264_s18, 2 }
 0xfe0   : > { %v2532_v13 = vpop.eup %2531  ;;  %p2559_p1 = scmp.lt.s32.totalorder %s2557_s22, %s2553_s5 }
 0xfe1   : > { %v2090_v14 = vmul.f32 %v2532_v13, %v2088_v12  ;;  %vm2096_vm13 = vweird.f32 %v2532_v13 }
 0xfe2   : > { %vm2097_vm15 = vmor %vm2095_vm14, %vm2096_vm13  ;;  %p2560_p2 = por %p2559_p1, %p2558_p0 }
 0xfe3   : > { %v2091_v15 = vmul.f32 %v2532_v13, %v2090_v14 }
 0xfe4   : > { %p2561_p3 = pnand %p2560_p2, %p2556_p13 }
 0xfe5   : > { %v2092_v49 = vmul.f32 0.5, %v2091_v15 }
 0xfe7   : > { %v2093_v17 = vsub.f32 1.5, %v2092_v49 }
 0xfe9   : > { %v2094_v18 = vmul.f32 %v2532_v13, %v2093_v17 }
 0xfeb   : > { %v2098_v19 = vsel %vm2097_vm15, %v2532_v13, %v2094_v18 }
 0xfec   : > { %2284 = vpush %v2098_v19 }
0x101d   : > { %s2285_s2 = spop %2284 }
0x101e   : > { %v2100_v21 = vstv %s2285_s2  ;;  %s568_s2 = sand.u32 1, %s2591_s19  }
0x101f   : > { %v2101_v34 = vmul.f32 %v2100_v21, %v2066_v39  ;;  %s569_s29 = scalar_lea.vmem [#allocation4], %s568_s2  ;;  %s2127_s3 = scalar_lea.sflag [#allocation5], %s568_s2 }
0x1020   : > { %s2137_s26 = sshll.u32 %s569_s29, 4  ;;  %s2138_s26 = int_to_ptr.vmem [resolvable:$true] %s2137_s26 }
0x1021   : > { %v2103_v24 = vmul.f32 %v2102_v22, %v2101_v34 }
0x1023   : > { %v2105_v25 = vadd.f32 %v2104_v23, %v2103_v24 }
0x1025   : > { %2109 = vperm.xlu2 %2391, %v2105_v25  }
0x107f   : > { %v2110_v28 = vpop.permute.xlu2 %2109 }
0x1080   : > { %v2112_v29 = vmul.f32 %v2110_v28, %v2106_v26 }
0x1082   : > { %v2114_v35 = vsel %vm2113_vm0, %v2112_v29, 0.0 }
0x1083   : > { %v2115_v30 = vrot.slane %v2114_v35, 4 }
0x1085   : > { %v2116_v40 = vadd.f32 %v2115_v30, %v2114_v35 }
0x1087   : > { %v2117_v32 = vrot.slane %v2116_v40, 2 }
0x1089   : > { %v2118_v4 = vadd.f32 %v2117_v32, %v2116_v40 }
0x108b   : > { %v2119_v36 = vrot.slane %v2118_v4, 1 }
0x108d   : > { %v2120_v41 = vadd.f32 %v2119_v36, %v2118_v4 }
0x108f   : > { %v2123_v42 = vadd.f32 %v2122_v37, %v2120_v41 }
0x1091   : > { %2125 = vst.msk [vmem:[%s569_s29] sm:$0x1] %vm2124_vm1, %v2123_v42 }
0x1092   : > { %2564 = shalt.err (!%p2561_p3)
}
0x1093   : > { %2286 = dma.vmem_to_hbm [thread:$0]  (%p2755_p5), %s2138_s26, 16, %s2140_s30, %s2127_s3  }
0x1094 PF: > { %p2292_p4 = scmp.ge.s32.totalorder %s2599_s20, 2  ;;  %s2151_s2 = sand.u32 1, %s2587_s0  }
0x1095   : > { %s2152_s29 = scalar_lea.sflag [#allocation5], %s2151_s2 }
0x1096   : > { %p2289_p7 = pnand %p2292_p4, %p2759_p6 }
0x1098   : > { %p2290_p8 = pneg %p2289_p7 }
0x109a   : > { %2582 = dma.done.wait (%p2290_p8), %s2152_s29, 16  }
0x109b   : > { %2584 = vsyncadd (%p2290_p8), %s2152_s29, 4294967280  ;;  %s3281_s4 = sld [smem:[#allocation7_spill]]  ;;  %p30_p9 = scmp.ge.s32.totalorder %s2742_s21, 4  }
0x109c   : > { %s3282_s0 = smov %s2591_s19  ;;  %s3283_s19 = smov %s2595_s1 }
0x109d   : > { %s3285_s20 = smov %s2742_s21  ;;  %32 = sbr.rel (!%p30_p9) target bundleno = 12 (0xc), region = 130 }
0x10a1   : > { %s3284_s1 = smov %s3281_s4 }
0x10a2   :  { %2157 = vsyncpa [#allocation5], 1 }
0x10a3   :  { %2159 = vsyncpa [#allocation5 + $0x1], 1 }

</bundles_post_ra>
